<compile_context>
chip_gen: v7x
topology: tpu7x:2x2x1
jax: 0.10.0
libtpu: 0.0.40
codegen_flags: <defaults>
</compile_context>

<pallas_src>
import functools
import math

import jax
import jax.numpy as jnp
from jax import lax
from jax.experimental import pallas as pl
from jax.experimental.pallas import tpu as pltpu


def _round_up(x, m):
    return (x + m - 1) // m * m


# ----------------------------------------------------------------------------
# Pallas kernel: one LSTM layer, both directions via grid axis 0,
# time chunks via grid axis 1 (pipelined), h/c carried in VMEM scratch.
# ----------------------------------------------------------------------------
def lstm_layer_kernel(x_ref, wih_ref, whh_ref, b_ref, out_ref,
                      h_scr, c_scr, xg_scr, *, T_real, Tc, Bp):
    # x_ref:   (Tc*Bp, Ip)    current time-chunk, time-major rows (t*Bp + b)
    # wih_ref: (Ip, 4*Hp)     input->gates weights for this direction
    # whh_ref: (Hp, 4*Hp)     hidden->gates weights for this direction
    # b_ref:   (1, 4*Hp)      b_ih + b_hh (gate-block padded)
    # out_ref: (Tc*Bp, Hp)    per-timestep hidden states for this direction
    # h_scr / c_scr: (Bp, Hp) recurrent state (persists across time chunks)
    # xg_scr:  (Tc*Bp, 4*Hp)  hoisted input-projection for the whole chunk
    d = pl.program_id(0)            # direction
    c = pl.program_id(1)            # time-chunk index (processing order)
    NC = pl.num_programs(1)
    Hp = h_scr.shape[-1]

    # Reset recurrent state at the start of each direction's sweep.
    @pl.when(c == 0)
    def _():
        h_scr[...] = jnp.zeros_like(h_scr)
        c_scr[...] = jnp.zeros_like(c_scr)

    # Hoisted input projection: one MXU-friendly GEMM for the whole chunk,
    # bias added once (no per-step broadcast inside the loop).
    xg_scr[...] = (
        jnp.dot(x_ref[...], wih_ref[...], preferred_element_type=jnp.float32)
        + b_ref[...]
    )

    # Which chunk of the array is actually resident (reversed for dir 1).
    blk = c + d * (NC - 1 - 2 * c)

    def step(s, carry):
        # In-chunk row index in processing order (reversed for dir 1).
        r = s + d * (Tc - 1 - 2 * s)
        pos = blk * Tc + r                       # original time index
        valid = pos < T_real                     # mask padded timesteps

        row = pl.multiple_of(r * Bp, Bp)
        h_prev = h_scr[...]
        c_prev = c_scr[...]

        # Only the recurrent matmul remains serialized per step.
        gates = xg_scr[pl.ds(row, Bp), :] + jnp.dot(
            h_prev, whh_ref[...], preferred_element_type=jnp.float32)

        # PyTorch gate order: i, f, g, o — each slice is a full 128-lane block.
        i_g = jax.nn.sigmoid(gates[:, 0 * Hp:1 * Hp])
        f_g = jax.nn.sigmoid(gates[:, 1 * Hp:2 * Hp])
        g_g = jnp.tanh(gates[:, 2 * Hp:3 * Hp])
        o_g = jax.nn.sigmoid(gates[:, 3 * Hp:4 * Hp])

        c_new = f_g * c_prev + i_g * g_g
        h_new = o_g * jnp.tanh(c_new)
        c_new = jnp.where(valid, c_new, c_prev)
        h_new = jnp.where(valid, h_new, h_prev)

        c_scr[...] = c_new
        h_scr[...] = h_new
        out_ref[pl.ds(row, Bp), :] = h_new.astype(out_ref.dtype)
        return carry

    lax.fori_loop(0, Tc, step, 0)


# ----------------------------------------------------------------------------
# One layer (all directions) through pallas_call.
# ----------------------------------------------------------------------------
def _run_lstm_layer(x_flat, w_ih, w_hh, b, *, T, T_pad, Tc, Bp, Hp):
    # x_flat: (T_pad*Bp, Ip); w_ih: (nd, Ip, 4Hp); w_hh: (nd, Hp, 4Hp); b: (nd, 1, 4Hp)
    nd, Ip, _ = w_ih.shape
    NC = T_pad // Tc

    def x_map(dd, cc):
        return (cc + dd * (NC - 1 - 2 * cc), 0)

    def w_map(dd, cc):
        return (dd, 0, 0)

    def out_map(dd, cc):
        return (cc + dd * (NC - 1 - 2 * cc), dd)

    kernel = functools.partial(lstm_layer_kernel, T_real=T, Tc=Tc, Bp=Bp)

    # VMEM footprint estimate: double-buffered x/out chunks + resident weights
    # + scratch; keep the explicit limit safely under v7x's 64 MiB.
    est = 4 * (2 * Tc * Bp * (Ip + Hp)
               + 2 * (Ip + Hp + 8) * 4 * Hp
               + 2 * Bp * Hp
               + Tc * Bp * 4 * Hp)
    vmem_limit = int(min(max(2 * est + (8 << 20), 32 << 20), 60 << 20))

    out = pl.pallas_call(
        kernel,
        out_shape=jax.ShapeDtypeStruct((T_pad * Bp, nd * Hp), jnp.float32),
        grid_spec=pltpu.PrefetchScalarGridSpec(
            num_scalar_prefetch=0,
            grid=(nd, NC),
            in_specs=[
                pl.BlockSpec((Tc * Bp, Ip), x_map),
                pl.BlockSpec((None, Ip, 4 * Hp), w_map),
                pl.BlockSpec((None, Hp, 4 * Hp), w_map),
                pl.BlockSpec((None, 1, 4 * Hp), w_map),
            ],
            out_specs=pl.BlockSpec((Tc * Bp, Hp), out_map),
            scratch_shapes=[
                pltpu.VMEM((Bp, Hp), jnp.float32),         # h
                pltpu.VMEM((Bp, Hp), jnp.float32),         # c
                pltpu.VMEM((Tc * Bp, 4 * Hp), jnp.float32),  # hoisted x-gates
            ],
        ),
        compiler_params=pltpu.CompilerParams(
            dimension_semantics=("parallel", "arbitrary"),
            vmem_limit_bytes=vmem_limit,
        ),
    )(x_flat, w_ih, w_hh, b)
    return out  # (T_pad*Bp, nd*Hp)


def _choose_tc(T, Bp, Ip_max, Hp, budget=6 << 20):
    per_t = 4 * Bp * (2 * Ip_max + 2 * Hp + 4 * Hp)
    tc = max(1, min(T, 256, budget // max(per_t, 1)))
    return int(tc)


# ----------------------------------------------------------------------------
# Multi-layer / bidirectional wrapper (glue, plain JAX).
# ----------------------------------------------------------------------------
def rnn_forward(x, packed_params, hidden_size):
    """x: (B, T, I) batch-first, like the PyTorch module.
    packed_params: list (per layer) of stacked padded kernel weights.
    Returns (B, T, num_directions * hidden_size)."""
    B, T, I = x.shape
    num_layers = len(packed_params)
    nd = packed_params[0][0].shape[0]
    Hp = packed_params[0][1].shape[1]
    Ip0 = packed_params[0][0].shape[1]
    H = hidden_size

    Bp = _round_up(B, 8)
    Ip_max = max(Ip0, nd * Hp)
    Tc = _choose_tc(T, Bp, Ip_max, Hp)
    T_pad = _round_up(T, Tc)

    # Single transpose + pad of the original input; layers run time-major.
    x_tm = jnp.transpose(x, (1, 0, 2))                          # (T, B, I)
    x_tm = jnp.pad(x_tm, ((0, T_pad - T), (0, Bp - B), (0, Ip0 - I)))
    layer_in = x_tm.reshape(T_pad * Bp, Ip0)

    for layer in range(num_layers):
        w_ih_s, w_hh_s, b_s = packed_params[layer]
        layer_in = _run_lstm_layer(layer_in, w_ih_s, w_hh_s, b_s,
                                   T=T, T_pad=T_pad, Tc=Tc, Bp=Bp, Hp=Hp)
        # TODO(synk): PyTorch applies inter-layer dropout only in training mode;
        # this kernel reproduces eval semantics / dropout=0 (deterministic).

    y = layer_in.reshape(T_pad, Bp, nd * Hp)[:T, :B]            # (T, B, nd*Hp)
    parts = [y[:, :, dd * Hp:dd * Hp + H] for dd in range(nd)]
    y = jnp.concatenate(parts, axis=-1)                         # (T, B, nd*H)
    return jnp.transpose(y, (1, 0, 2))                          # (B, T, nd*H)


# ----------------------------------------------------------------------------
# Convert PyTorch-layout LSTM weights into the padded, stacked kernel layout.
# ----------------------------------------------------------------------------
def pack_params_for_kernel(params, input_size, hidden_size, num_layers,
                           bidirectional):
    nd = 2 if bidirectional else 1
    H = hidden_size
    Hp = _round_up(H, 128)
    Ip0 = _round_up(input_size, 128)
    packed = []
    for layer in range(num_layers):
        in_pad = Ip0 if layer == 0 else nd * Hp
        wih_l, whh_l, b_l = [], [], []
        for dd in range(nd):
            w_ih, w_hh, b_ih, b_hh = params[(layer, dd)]
            wih_t = w_ih.T                          # (in_dim, 4H)
            whh_t = w_hh.T                          # (H, 4H)
            bias = (b_ih + b_hh).reshape(1, 4 * H)

            wih_p = jnp.zeros((in_pad, 4 * Hp), jnp.float32)
            whh_p = jnp.zeros((Hp, 4 * Hp), jnp.float32)
            b_p = jnp.zeros((1, 4 * Hp), jnp.float32)
            for k in range(4):                       # gates i, f, g, o
                col = slice(k * Hp, k * Hp + H)
                src = slice(k * H, (k + 1) * H)
                if layer == 0:
                    wih_p = wih_p.at[:input_size, col].set(wih_t[:, src])
                else:
                    # Input of layer>0 is the padded concat of direction outputs:
                    # direction sd's real units live at rows sd*Hp .. sd*Hp+H-1.
                    for sd in range(nd):
                        wih_p = wih_p.at[sd * Hp:sd * Hp + H, col].set(
                            wih_t[sd * H:(sd + 1) * H, src])
                whh_p = whh_p.at[:H, col].set(whh_t[:, src])
                b_p = b_p.at[:, col].set(bias[:, src])
            wih_l.append(wih_p)
            whh_l.append(whh_p)
            b_l.append(b_p)
        packed.append((jnp.stack(wih_l), jnp.stack(whh_l), jnp.stack(b_l)))
    return packed


# ----------------------------------------------------------------------------
# Pure-JAX reference (for correctness check), PyTorch-layout weights.
# ----------------------------------------------------------------------------
def lstm_ref(x, params, num_layers, bidirectional, hidden_size):
    nd = 2 if bidirectional else 1
    B = x.shape[0]
    H = hidden_size
    layer_in = x
    for layer in range(num_layers):
        dir_outs = []
        for dd in range(nd):
            w_ih, w_hh, b_ih, b_hh = params[(layer, dd)]
            xin = layer_in if dd == 0 else jnp.flip(layer_in, axis=1)
            h = jnp.zeros((B, H), jnp.float32)
            c = jnp.zeros((B, H), jnp.float32)
            outs = []
            for t in range(xin.shape[1]):
                gates = xin[:, t, :] @ w_ih.T + h @ w_hh.T + b_ih + b_hh
                i_g = jax.nn.sigmoid(gates[:, 0 * H:1 * H])
                f_g = jax.nn.sigmoid(gates[:, 1 * H:2 * H])
                g_g = jnp.tanh(gates[:, 2 * H:3 * H])
                o_g = jax.nn.sigmoid(gates[:, 3 * H:4 * H])
                c = f_g * c + i_g * g_g
                h = o_g * jnp.tanh(c)
                outs.append(h)
            out = jnp.stack(outs, axis=1)
            if dd == 1:
                out = jnp.flip(out, axis=1)
            dir_outs.append(out)
        layer_in = jnp.concatenate(dir_outs, axis=-1)
    return layer_in


# ----------------------------------------------------------------------------
# Deterministic parameter init (PyTorch LSTM style: U(-1/sqrt(H), 1/sqrt(H))).
# ----------------------------------------------------------------------------
def init_params(key, input_size, hidden_size, num_layers, bidirectional):
    nd = 2 if bidirectional else 1
    bound = 1.0 / math.sqrt(hidden_size)
    params = {}
    for layer in range(num_layers):
        in_dim = input_size if layer == 0 else hidden_size * nd
        for dd in range(nd):
            key, k1, k2, k3, k4 = jax.random.split(key, 5)
            w_ih = jax.random.uniform(k1, (4 * hidden_size, in_dim),
                                      jnp.float32, -bound, bound)
            w_hh = jax.random.uniform(k2, (4 * hidden_size, hidden_size),
                                      jnp.float32, -bound, bound)
            b_ih = jax.random.uniform(k3, (4 * hidden_size,),
                                      jnp.float32, -bound, bound)
            b_hh = jax.random.uniform(k4, (4 * hidden_size,),
                                      jnp.float32, -bound, bound)
            params[(layer, dd)] = (w_ih, w_hh, b_ih, b_hh)
    return params


if __name__ == "__main__":
    # Small shapes consistent with the module's forward.
    B, T = 2, 8
    input_size, hidden_size = 16, 32
    num_layers, bidirectional = 2, True

    key = jax.random.PRNGKey(0)
    key, xk = jax.random.split(key)
    x = jax.random.normal(xk, (B, T, input_size), jnp.float32)

    params = init_params(key, input_size, hidden_size, num_layers, bidirectional)
    packed = pack_params_for_kernel(params, input_size, hidden_size,
                                    num_layers, bidirectional)

    fwd = jax.jit(functools.partial(rnn_forward, hidden_size=hidden_size))
    out = fwd(x, packed)
    out = jax.block_until_ready(out)

    ref = lstm_ref(x, params, num_layers, bidirectional, hidden_size)
    nd = 2 if bidirectional else 1
    assert out.shape == (B, T, nd * hidden_size)
    assert jnp.allclose(out, ref, atol=1e-4, rtol=1e-4), "mismatch vs reference"

    print("KERNEL_OK")
</pallas_src>

<mosaic_0001>
module attributes {stable_mosaic.version = 11 : i64} {
  func.func @lstm_layer_kernel(%arg0: i32, %arg1: i32, %arg2: memref<64x256xf32, #tpu.memory_space<vmem>>, %arg3: memref<1x256x512xf32, #tpu.memory_space<vmem>>, %arg4: memref<1x128x512xf32, #tpu.memory_space<vmem>>, %arg5: memref<1x1x512xf32, #tpu.memory_space<vmem>>, %arg6: memref<64x128xf32, #tpu.memory_space<vmem>>, %arg7: memref<8x128xf32, #tpu.memory_space<vmem>>, %arg8: memref<8x128xf32, #tpu.memory_space<vmem>>, %arg9: memref<64x512xf32, #tpu.memory_space<vmem>>) attributes {dimension_semantics = [#tpu.dimension_semantics<parallel>, #tpu.dimension_semantics<arbitrary>], iteration_bounds = array<i64: 2, 1>, scalar_prefetch = 0 : i64, scratch_operands = 3 : i64, tpu.core_type = #tpu.core_type<tc>, window_params = [{transform_indices = @transform_0, window_bounds = array<i64: 64, 256>}, {transform_indices = @transform_1, window_bounds = array<i64: 1, 256, 512>}, {transform_indices = @transform_2, window_bounds = array<i64: 1, 128, 512>}, {transform_indices = @transform_3, window_bounds = array<i64: 1, 1, 512>}, {transform_indices = @transform_4, window_bounds = array<i64: 64, 128>}]} {
    %c0_i32 = arith.constant 0 : i32
    %0 = arith.cmpi eq, %arg1, %c0_i32 : i32
    %1 = arith.extui %0 : i1 to i32
    %c0_i32_0 = arith.constant 0 : i32
    %2 = arith.cmpi ne, %1, %c0_i32_0 : i32
    scf.if %2 {
      %cst_13 = arith.constant 0.000000e+00 : f32
      %17 = vector.broadcast %cst_13 : f32 to vector<8x128xf32>
      %c0_14 = arith.constant 0 : index
      %c0_15 = arith.constant 0 : index
      %18 = vector.load %arg7[%c0_14, %c0_15] : memref<8x128xf32, #tpu.memory_space<vmem>>, vector<8x128xf32>
      tpu.vector_store %arg7[%c0_14, %c0_15], %17 {strides = array<i32>} : memref<8x128xf32, #tpu.memory_space<vmem>>, vector<8x128xf32>,
      %cst_16 = arith.constant 0.000000e+00 : f32
      %19 = vector.broadcast %cst_16 : f32 to vector<8x128xf32>
      %c0_17 = arith.constant 0 : index
      %c0_18 = arith.constant 0 : index
      %20 = vector.load %arg8[%c0_17, %c0_18] : memref<8x128xf32, #tpu.memory_space<vmem>>, vector<8x128xf32>
      tpu.vector_store %arg8[%c0_17, %c0_18], %19 {strides = array<i32>} : memref<8x128xf32, #tpu.memory_space<vmem>>, vector<8x128xf32>,
    } else {
    }
    %c0 = arith.constant 0 : index
    %c0_1 = arith.constant 0 : index
    %3 = vector.load %arg2[%c0, %c0_1] : memref<64x256xf32, #tpu.memory_space<vmem>>, vector<64x256xf32>
    %c0_2 = arith.constant 0 : index
    %c0_3 = arith.constant 0 : index
    %c0_4 = arith.constant 0 : index
    %4 = vector.load %arg3[%c0_2, %c0_3, %c0_4] : memref<1x256x512xf32, #tpu.memory_space<vmem>>, vector<1x256x512xf32>
    %5 = vector.shape_cast %4 : vector<1x256x512xf32> to vector<256x512xf32>
    %cst = arith.constant dense<0.000000e+00> : vector<64x512xf32>
    %6 = tpu.matmul %3, %5, %cst {dimension_numbers = #tpu.dot_dimension_numbers<[1], [0], [0], [1], [0, 0, 1, 1], [], []>} : vector<64x256xf32>, vector<256x512xf32>, vector<64x512xf32> -> vector<64x512xf32>
    %c0_5 = arith.constant 0 : index
    %c0_6 = arith.constant 0 : index
    %c0_7 = arith.constant 0 : index
    %7 = vector.load %arg5[%c0_5, %c0_6, %c0_7] : memref<1x1x512xf32, #tpu.memory_space<vmem>>, vector<1x1x512xf32>
    %8 = vector.shape_cast %7 : vector<1x1x512xf32> to vector<1x512xf32>
    %9 = vector.broadcast %8 : vector<1x512xf32> to vector<64x512xf32>
    %10 = arith.addf %6, %9 : vector<64x512xf32>
    %c0_8 = arith.constant 0 : index
    %c0_9 = arith.constant 0 : index
    %11 = vector.load %arg9[%c0_8, %c0_9] : memref<64x512xf32, #tpu.memory_space<vmem>>, vector<64x512xf32>
    tpu.vector_store %arg9[%c0_8, %c0_9], %10 {strides = array<i32>} : memref<64x512xf32, #tpu.memory_space<vmem>>, vector<64x512xf32>,
    %c2_i32 = arith.constant 2 : i32
    %12 = arith.muli %c2_i32, %arg1 : i32
    %c0_i32_10 = arith.constant 0 : i32
    %13 = arith.subi %c0_i32_10, %12 : i32
    %14 = arith.muli %arg0, %13 : i32
    %15 = arith.addi %arg1, %14 : i32
    %c0_i32_11 = arith.constant 0 : i32
    %c8_i32 = arith.constant 8 : i32
    %16 = arith.addi %c0_i32_11, %c8_i32 : i32
    %c1_i32 = arith.constant 1 : i32
    scf.for %arg10 = %c0_i32_11 to %16 step %c1_i32  : i32 {
      %c2_i32_13 = arith.constant 2 : i32
      %17 = arith.muli %c2_i32_13, %arg10 : i32
      %c7_i32 = arith.constant 7 : i32
      %18 = arith.subi %c7_i32, %17 : i32
      %19 = arith.muli %arg0, %18 : i32
      %20 = arith.addi %arg10, %19 : i32
      %c8_i32_14 = arith.constant 8 : i32
      %21 = arith.muli %15, %c8_i32_14 : i32
      %22 = arith.addi %21, %20 : i32
      %c8_i32_15 = arith.constant 8 : i32
      %23 = arith.cmpi slt, %22, %c8_i32_15 : i32
      %c8_i32_16 = arith.constant 8 : i32
      %24 = arith.muli %20, %c8_i32_16 : i32
      %25 = tpu.assume_multiple %24, 8 : i32
      %c0_17 = arith.constant 0 : index
      %c0_18 = arith.constant 0 : index
      %26 = vector.load %arg7[%c0_17, %c0_18] : memref<8x128xf32, #tpu.memory_space<vmem>>, vector<8x128xf32>
      %c0_19 = arith.constant 0 : index
      %c0_20 = arith.constant 0 : index
      %27 = vector.load %arg8[%c0_19, %c0_20] : memref<8x128xf32, #tpu.memory_space<vmem>>, vector<8x128xf32>
      %28 = arith.index_cast %25 : i32 to index
      %c0_21 = arith.constant 0 : index
      %29 = vector.load %arg9[%28, %c0_21] : memref<64x512xf32, #tpu.memory_space<vmem>>, vector<8x512xf32>
      %c0_22 = arith.constant 0 : index
      %c0_23 = arith.constant 0 : index
      %c0_24 = arith.constant 0 : index
      %30 = vector.load %arg4[%c0_22, %c0_23, %c0_24] : memref<1x128x512xf32, #tpu.memory_space<vmem>>, vector<1x128x512xf32>
      %31 = vector.shape_cast %30 : vector<1x128x512xf32> to vector<128x512xf32>
      %cst_25 = arith.constant dense<0.000000e+00> : vector<8x512xf32>
      %32 = tpu.matmul %26, %31, %cst_25 {dimension_numbers = #tpu.dot_dimension_numbers<[1], [0], [0], [1], [0, 0, 1, 1], [], []>} : vector<8x128xf32>, vector<128x512xf32>, vector<8x512xf32> -> vector<8x512xf32>
      %33 = arith.addf %29, %32 : vector<8x512xf32>
      %34 = vector.extract_strided_slice %33 {offsets = [0, 0], sizes = [8, 128], strides = [1, 1]} : vector<8x512xf32> to vector<8x128xf32>
      %35 = arith.negf %34 : vector<8x128xf32>
      %36 = math.exp %35 : vector<8x128xf32>
      %cst_26 = arith.constant 1.000000e+00 : f32
      %37 = vector.broadcast %cst_26 : f32 to vector<8x128xf32>
      %38 = arith.addf %37, %36 : vector<8x128xf32>
      %39 = arith.divf %37, %38 : vector<8x128xf32>
      %40 = vector.extract_strided_slice %33 {offsets = [0, 128], sizes = [8, 128], strides = [1, 1]} : vector<8x512xf32> to vector<8x128xf32>
      %41 = arith.negf %40 : vector<8x128xf32>
      %42 = math.exp %41 : vector<8x128xf32>
      %cst_27 = arith.constant 1.000000e+00 : f32
      %43 = vector.broadcast %cst_27 : f32 to vector<8x128xf32>
      %44 = arith.addf %43, %42 : vector<8x128xf32>
      %45 = arith.divf %43, %44 : vector<8x128xf32>
      %46 = vector.extract_strided_slice %33 {offsets = [0, 256], sizes = [8, 128], strides = [1, 1]} : vector<8x512xf32> to vector<8x128xf32>
      %47 = math.tanh %46 : vector<8x128xf32>
      %48 = vector.extract_strided_slice %33 {offsets = [0, 384], sizes = [8, 128], strides = [1, 1]} : vector<8x512xf32> to vector<8x128xf32>
      %49 = arith.negf %48 : vector<8x128xf32>
      %50 = math.exp %49 : vector<8x128xf32>
      %cst_28 = arith.constant 1.000000e+00 : f32
      %51 = vector.broadcast %cst_28 : f32 to vector<8x128xf32>
      %52 = arith.addf %51, %50 : vector<8x128xf32>
      %53 = arith.divf %51, %52 : vector<8x128xf32>
      %54 = arith.mulf %45, %27 : vector<8x128xf32>
      %55 = arith.mulf %39, %47 : vector<8x128xf32>
      %56 = arith.addf %54, %55 : vector<8x128xf32>
      %57 = math.tanh %56 : vector<8x128xf32>
      %58 = arith.mulf %53, %57 : vector<8x128xf32>
      %59 = arith.select %23, %56, %27 : vector<8x128xf32>
      %60 = arith.select %23, %58, %26 : vector<8x128xf32>
      %c0_29 = arith.constant 0 : index
      %c0_30 = arith.constant 0 : index
      %61 = vector.load %arg8[%c0_29, %c0_30] : memref<8x128xf32, #tpu.memory_space<vmem>>, vector<8x128xf32>
      tpu.vector_store %arg8[%c0_29, %c0_30], %59 {strides = array<i32>} : memref<8x128xf32, #tpu.memory_space<vmem>>, vector<8x128xf32>,
      %c0_31 = arith.constant 0 : index
      %c0_32 = arith.constant 0 : index
      %62 = vector.load %arg7[%c0_31, %c0_32] : memref<8x128xf32, #tpu.memory_space<vmem>>, vector<8x128xf32>
      tpu.vector_store %arg7[%c0_31, %c0_32], %60 {strides = array<i32>} : memref<8x128xf32, #tpu.memory_space<vmem>>, vector<8x128xf32>,
      %63 = arith.index_cast %25 : i32 to index
      %c0_33 = arith.constant 0 : index
      %64 = vector.load %arg6[%63, %c0_33] : memref<64x128xf32, #tpu.memory_space<vmem>>, vector<8x128xf32>
      tpu.vector_store %arg6[%63, %c0_33], %60 {strides = array<i32>} : memref<64x128xf32, #tpu.memory_space<vmem>>, vector<8x128xf32>,
    }
    %c8_i32_12 = arith.constant 8 : i32
    return
  }
  func.func @transform_0(%arg0: i32, %arg1: i32) -> (i32, i32) {
    %c2_i32 = arith.constant 2 : i32
    %0 = arith.muli %c2_i32, %arg1 : i32
    %c0_i32 = arith.constant 0 : i32
    %1 = arith.subi %c0_i32, %0 : i32
    %2 = arith.muli %arg0, %1 : i32
    %3 = arith.addi %arg1, %2 : i32
    %c0_i32_0 = arith.constant 0 : i32
    %c0_i32_1 = arith.constant 0 : i32
    return %3, %c0_i32_0 : i32, i32
  }
  func.func @transform_1(%arg0: i32, %arg1: i32) -> (i32, i32, i32) {
    %c0_i32 = arith.constant 0 : i32
    %c0_i32_0 = arith.constant 0 : i32
    %c0_i32_1 = arith.constant 0 : i32
    return %arg0, %c0_i32, %c0_i32_0 : i32, i32, i32
  }
  func.func @transform_2(%arg0: i32, %arg1: i32) -> (i32, i32, i32) {
    %c0_i32 = arith.constant 0 : i32
    %c0_i32_0 = arith.constant 0 : i32
    %c0_i32_1 = arith.constant 0 : i32
    return %arg0, %c0_i32, %c0_i32_0 : i32, i32, i32
  }
  func.func @transform_3(%arg0: i32, %arg1: i32) -> (i32, i32, i32) {
    %c0_i32 = arith.constant 0 : i32
    %c0_i32_0 = arith.constant 0 : i32
    %c0_i32_1 = arith.constant 0 : i32
    return %arg0, %c0_i32, %c0_i32_0 : i32, i32, i32
  }
  func.func @transform_4(%arg0: i32, %arg1: i32) -> (i32, i32) {
    %c2_i32 = arith.constant 2 : i32
    %0 = arith.muli %c2_i32, %arg1 : i32
    %c0_i32 = arith.constant 0 : i32
    %1 = arith.subi %c0_i32, %0 : i32
    %2 = arith.muli %arg0, %1 : i32
    %3 = arith.addi %arg1, %2 : i32
    %c0_i32_0 = arith.constant 0 : i32
    return %3, %arg0 : i32, i32
  }
}

module attributes {stable_mosaic.version = 11 : i64} {
  func.func @lstm_layer_kernel(%arg0: i32, %arg1: i32, %arg2: memref<64x128xf32, #tpu.memory_space<vmem>>, %arg3: memref<1x128x512xf32, #tpu.memory_space<vmem>>, %arg4: memref<1x128x512xf32, #tpu.memory_space<vmem>>, %arg5: memref<1x1x512xf32, #tpu.memory_space<vmem>>, %arg6: memref<64x128xf32, #tpu.memory_space<vmem>>, %arg7: memref<8x128xf32, #tpu.memory_space<vmem>>, %arg8: memref<8x128xf32, #tpu.memory_space<vmem>>, %arg9: memref<64x512xf32, #tpu.memory_space<vmem>>) attributes {dimension_semantics = [#tpu.dimension_semantics<parallel>, #tpu.dimension_semantics<arbitrary>], iteration_bounds = array<i64: 2, 1>, scalar_prefetch = 0 : i64, scratch_operands = 3 : i64, tpu.core_type = #tpu.core_type<tc>, window_params = [{transform_indices = @transform_0, window_bounds = array<i64: 64, 128>}, {transform_indices = @transform_1, window_bounds = array<i64: 1, 128, 512>}, {transform_indices = @transform_2, window_bounds = array<i64: 1, 128, 512>}, {transform_indices = @transform_3, window_bounds = array<i64: 1, 1, 512>}, {transform_indices = @transform_4, window_bounds = array<i64: 64, 128>}]} {
    %c0_i32 = arith.constant 0 : i32
    %0 = arith.cmpi eq, %arg1, %c0_i32 : i32
    %1 = arith.extui %0 : i1 to i32
    %c0_i32_0 = arith.constant 0 : i32
    %2 = arith.cmpi ne, %1, %c0_i32_0 : i32
    scf.if %2 {
      %cst_13 = arith.constant 0.000000e+00 : f32
      %17 = vector.broadcast %cst_13 : f32 to vector<8x128xf32>
      %c0_14 = arith.constant 0 : index
      %c0_15 = arith.constant 0 : index
      %18 = vector.load %arg7[%c0_14, %c0_15] : memref<8x128xf32, #tpu.memory_space<vmem>>, vector<8x128xf32>
      tpu.vector_store %arg7[%c0_14, %c0_15], %17 {strides = array<i32>} : memref<8x128xf32, #tpu.memory_space<vmem>>, vector<8x128xf32>,
      %cst_16 = arith.constant 0.000000e+00 : f32
      %19 = vector.broadcast %cst_16 : f32 to vector<8x128xf32>
      %c0_17 = arith.constant 0 : index
      %c0_18 = arith.constant 0 : index
      %20 = vector.load %arg8[%c0_17, %c0_18] : memref<8x128xf32, #tpu.memory_space<vmem>>, vector<8x128xf32>
      tpu.vector_store %arg8[%c0_17, %c0_18], %19 {strides = array<i32>} : memref<8x128xf32, #tpu.memory_space<vmem>>, vector<8x128xf32>,
    } else {
    }
    %c0 = arith.constant 0 : index
    %c0_1 = arith.constant 0 : index
    %3 = vector.load %arg2[%c0, %c0_1] : memref<64x128xf32, #tpu.memory_space<vmem>>, vector<64x128xf32>
    %c0_2 = arith.constant 0 : index
    %c0_3 = arith.constant 0 : index
    %c0_4 = arith.constant 0 : index
    %4 = vector.load %arg3[%c0_2, %c0_3, %c0_4] : memref<1x128x512xf32, #tpu.memory_space<vmem>>, vector<1x128x512xf32>
    %5 = vector.shape_cast %4 : vector<1x128x512xf32> to vector<128x512xf32>
    %cst = arith.constant dense<0.000000e+00> : vector<64x512xf32>
    %6 = tpu.matmul %3, %5, %cst {dimension_numbers = #tpu.dot_dimension_numbers<[1], [0], [0], [1], [0, 0, 1, 1], [], []>} : vector<64x128xf32>, vector<128x512xf32>, vector<64x512xf32> -> vector<64x512xf32>
    %c0_5 = arith.constant 0 : index
    %c0_6 = arith.constant 0 : index
    %c0_7 = arith.constant 0 : index
    %7 = vector.load %arg5[%c0_5, %c0_6, %c0_7] : memref<1x1x512xf32, #tpu.memory_space<vmem>>, vector<1x1x512xf32>
    %8 = vector.shape_cast %7 : vector<1x1x512xf32> to vector<1x512xf32>
    %9 = vector.broadcast %8 : vector<1x512xf32> to vector<64x512xf32>
    %10 = arith.addf %6, %9 : vector<64x512xf32>
    %c0_8 = arith.constant 0 : index
    %c0_9 = arith.constant 0 : index
    %11 = vector.load %arg9[%c0_8, %c0_9] : memref<64x512xf32, #tpu.memory_space<vmem>>, vector<64x512xf32>
    tpu.vector_store %arg9[%c0_8, %c0_9], %10 {strides = array<i32>} : memref<64x512xf32, #tpu.memory_space<vmem>>, vector<64x512xf32>,
    %c2_i32 = arith.constant 2 : i32
    %12 = arith.muli %c2_i32, %arg1 : i32
    %c0_i32_10 = arith.constant 0 : i32
    %13 = arith.subi %c0_i32_10, %12 : i32
    %14 = arith.muli %arg0, %13 : i32
    %15 = arith.addi %arg1, %14 : i32
    %c0_i32_11 = arith.constant 0 : i32
    %c8_i32 = arith.constant 8 : i32
    %16 = arith.addi %c0_i32_11, %c8_i32 : i32
    %c1_i32 = arith.constant 1 : i32
    scf.for %arg10 = %c0_i32_11 to %16 step %c1_i32  : i32 {
      %c2_i32_13 = arith.constant 2 : i32
      %17 = arith.muli %c2_i32_13, %arg10 : i32
      %c7_i32 = arith.constant 7 : i32
      %18 = arith.subi %c7_i32, %17 : i32
      %19 = arith.muli %arg0, %18 : i32
      %20 = arith.addi %arg10, %19 : i32
      %c8_i32_14 = arith.constant 8 : i32
      %21 = arith.muli %15, %c8_i32_14 : i32
      %22 = arith.addi %21, %20 : i32
      %c8_i32_15 = arith.constant 8 : i32
      %23 = arith.cmpi slt, %22, %c8_i32_15 : i32
      %c8_i32_16 = arith.constant 8 : i32
      %24 = arith.muli %20, %c8_i32_16 : i32
      %25 = tpu.assume_multiple %24, 8 : i32
      %c0_17 = arith.constant 0 : index
      %c0_18 = arith.constant 0 : index
      %26 = vector.load %arg7[%c0_17, %c0_18] : memref<8x128xf32, #tpu.memory_space<vmem>>, vector<8x128xf32>
      %c0_19 = arith.constant 0 : index
      %c0_20 = arith.constant 0 : index
      %27 = vector.load %arg8[%c0_19, %c0_20] : memref<8x128xf32, #tpu.memory_space<vmem>>, vector<8x128xf32>
      %28 = arith.index_cast %25 : i32 to index
      %c0_21 = arith.constant 0 : index
      %29 = vector.load %arg9[%28, %c0_21] : memref<64x512xf32, #tpu.memory_space<vmem>>, vector<8x512xf32>
      %c0_22 = arith.constant 0 : index
      %c0_23 = arith.constant 0 : index
      %c0_24 = arith.constant 0 : index
      %30 = vector.load %arg4[%c0_22, %c0_23, %c0_24] : memref<1x128x512xf32, #tpu.memory_space<vmem>>, vector<1x128x512xf32>
      %31 = vector.shape_cast %30 : vector<1x128x512xf32> to vector<128x512xf32>
      %cst_25 = arith.constant dense<0.000000e+00> : vector<8x512xf32>
      %32 = tpu.matmul %26, %31, %cst_25 {dimension_numbers = #tpu.dot_dimension_numbers<[1], [0], [0], [1], [0, 0, 1, 1], [], []>} : vector<8x128xf32>, vector<128x512xf32>, vector<8x512xf32> -> vector<8x512xf32>
      %33 = arith.addf %29, %32 : vector<8x512xf32>
      %34 = vector.extract_strided_slice %33 {offsets = [0, 0], sizes = [8, 128], strides = [1, 1]} : vector<8x512xf32> to vector<8x128xf32>
      %35 = arith.negf %34 : vector<8x128xf32>
      %36 = math.exp %35 : vector<8x128xf32>
      %cst_26 = arith.constant 1.000000e+00 : f32
      %37 = vector.broadcast %cst_26 : f32 to vector<8x128xf32>
      %38 = arith.addf %37, %36 : vector<8x128xf32>
      %39 = arith.divf %37, %38 : vector<8x128xf32>
      %40 = vector.extract_strided_slice %33 {offsets = [0, 128], sizes = [8, 128], strides = [1, 1]} : vector<8x512xf32> to vector<8x128xf32>
      %41 = arith.negf %40 : vector<8x128xf32>
      %42 = math.exp %41 : vector<8x128xf32>
      %cst_27 = arith.constant 1.000000e+00 : f32
      %43 = vector.broadcast %cst_27 : f32 to vector<8x128xf32>
      %44 = arith.addf %43, %42 : vector<8x128xf32>
      %45 = arith.divf %43, %44 : vector<8x128xf32>
      %46 = vector.extract_strided_slice %33 {offsets = [0, 256], sizes = [8, 128], strides = [1, 1]} : vector<8x512xf32> to vector<8x128xf32>
      %47 = math.tanh %46 : vector<8x128xf32>
      %48 = vector.extract_strided_slice %33 {offsets = [0, 384], sizes = [8, 128], strides = [1, 1]} : vector<8x512xf32> to vector<8x128xf32>
      %49 = arith.negf %48 : vector<8x128xf32>
      %50 = math.exp %49 : vector<8x128xf32>
      %cst_28 = arith.constant 1.000000e+00 : f32
      %51 = vector.broadcast %cst_28 : f32 to vector<8x128xf32>
      %52 = arith.addf %51, %50 : vector<8x128xf32>
      %53 = arith.divf %51, %52 : vector<8x128xf32>
      %54 = arith.mulf %45, %27 : vector<8x128xf32>
      %55 = arith.mulf %39, %47 : vector<8x128xf32>
      %56 = arith.addf %54, %55 : vector<8x128xf32>
      %57 = math.tanh %56 : vector<8x128xf32>
      %58 = arith.mulf %53, %57 : vector<8x128xf32>
      %59 = arith.select %23, %56, %27 : vector<8x128xf32>
      %60 = arith.select %23, %58, %26 : vector<8x128xf32>
      %c0_29 = arith.constant 0 : index
      %c0_30 = arith.constant 0 : index
      %61 = vector.load %arg8[%c0_29, %c0_30] : memref<8x128xf32, #tpu.memory_space<vmem>>, vector<8x128xf32>
      tpu.vector_store %arg8[%c0_29, %c0_30], %59 {strides = array<i32>} : memref<8x128xf32, #tpu.memory_space<vmem>>, vector<8x128xf32>,
      %c0_31 = arith.constant 0 : index
      %c0_32 = arith.constant 0 : index
      %62 = vector.load %arg7[%c0_31, %c0_32] : memref<8x128xf32, #tpu.memory_space<vmem>>, vector<8x128xf32>
      tpu.vector_store %arg7[%c0_31, %c0_32], %60 {strides = array<i32>} : memref<8x128xf32, #tpu.memory_space<vmem>>, vector<8x128xf32>,
      %63 = arith.index_cast %25 : i32 to index
      %c0_33 = arith.constant 0 : index
      %64 = vector.load %arg6[%63, %c0_33] : memref<64x128xf32, #tpu.memory_space<vmem>>, vector<8x128xf32>
      tpu.vector_store %arg6[%63, %c0_33], %60 {strides = array<i32>} : memref<64x128xf32, #tpu.memory_space<vmem>>, vector<8x128xf32>,
    }
    %c8_i32_12 = arith.constant 8 : i32
    return
  }
  func.func @transform_0(%arg0: i32, %arg1: i32) -> (i32, i32) {
    %c2_i32 = arith.constant 2 : i32
    %0 = arith.muli %c2_i32, %arg1 : i32
    %c0_i32 = arith.constant 0 : i32
    %1 = arith.subi %c0_i32, %0 : i32
    %2 = arith.muli %arg0, %1 : i32
    %3 = arith.addi %arg1, %2 : i32
    %c0_i32_0 = arith.constant 0 : i32
    %c0_i32_1 = arith.constant 0 : i32
    return %3, %c0_i32_0 : i32, i32
  }
  func.func @transform_1(%arg0: i32, %arg1: i32) -> (i32, i32, i32) {
    %c0_i32 = arith.constant 0 : i32
    %c0_i32_0 = arith.constant 0 : i32
    %c0_i32_1 = arith.constant 0 : i32
    return %arg0, %c0_i32, %c0_i32_0 : i32, i32, i32
  }
  func.func @transform_2(%arg0: i32, %arg1: i32) -> (i32, i32, i32) {
    %c0_i32 = arith.constant 0 : i32
    %c0_i32_0 = arith.constant 0 : i32
    %c0_i32_1 = arith.constant 0 : i32
    return %arg0, %c0_i32, %c0_i32_0 : i32, i32, i32
  }
  func.func @transform_3(%arg0: i32, %arg1: i32) -> (i32, i32, i32) {
    %c0_i32 = arith.constant 0 : i32
    %c0_i32_0 = arith.constant 0 : i32
    %c0_i32_1 = arith.constant 0 : i32
    return %arg0, %c0_i32, %c0_i32_0 : i32, i32, i32
  }
  func.func @transform_4(%arg0: i32, %arg1: i32) -> (i32, i32) {
    %c2_i32 = arith.constant 2 : i32
    %0 = arith.muli %c2_i32, %arg1 : i32
    %c0_i32 = arith.constant 0 : i32
    %1 = arith.subi %c0_i32, %0 : i32
    %2 = arith.muli %arg0, %1 : i32
    %3 = arith.addi %arg1, %2 : i32
    %c0_i32_0 = arith.constant 0 : i32
    return %3, %arg0 : i32, i32
  }
}

</mosaic_0001>

<bundles_post_ra>
// kernel: rnn_forward.2
= control target key start
LH: loop header
LB: loop body
LE: loop exit
PB: predicated region body
PF: predicated region fallthrough
CT: control target
= control target key end

     0   :  { %s2125_s0 = inlined_call_operand.vmem [shape: f32[64,128], index: 0, kind: input, shape index: {}]   ;;  %s2126_s1 = inlined_call_operand.hbm [shape: f32[2,128,512], index: 1, kind: input, shape index: {}]   ;;  %s2127_s2 = inlined_call_operand.hbm [shape: f32[2,128,512], index: 2, kind: input, shape index: {}]   ;;  %s2128_s3 = inlined_call_operand.hbm [shape: f32[2,1,512], index: 3, kind: input, shape index: {}]   ;;  %s2129_s4 = inlined_call_operand.vmem [shape: f32[64,256], index: 4, kind: output, shape index: {}]  }
   0x1   :  { %2134 = sst [smem:[#allocation13_spill]] %s2126_s1 }
   0x2   :  { %2135 = sst [smem:[#allocation14_spill]] %s2127_s2 }
   0x3   :  { %9 = vsyncpa [#allocation6], 0 }
   0x4   :  { %11 = vsyncpa [#allocation6 + $0x1], 0 }
   0x5   :  { %12 = vsyncpa [#allocation8], 0 }
   0x6   :  { %14 = vsyncpa [#allocation8 + $0x1], 0  ;;  %s1649_s15 = smov 0   ;;  %s1651_s16 = smov 0  }
   0x7   :  { %s1653_s17 = smov 0   ;;  %s1655_s18 = smov 0  }
   0x8   :  { %s1657_s19 = smov 0   ;;  %s1659_s20 = smov 0  }
   0x9 LB: > { %s1678_s21 = sadd.s32 4294967295, %s1611_s20   ;;  %s32_s22 = sadd.s32 1, %s1607_s19  ;;  %s1611_s20 = sphi %s1659_s20, %s20_s20   ;;  %s1607_s19 = sphi %s1657_s19, %s2155_s19   ;;  %s1603_s18 = sphi %s1655_s18, %s2154_s18   ;;  %s1599_s17 = sphi %s1653_s17, %s2153_s17   ;;  %s1595_s16 = sphi %s1651_s16, %s2152_s16   ;;  %s1591_s15 = sphi %s1649_s15, %s2151_s15  }
   0xa   : > { %p34_p0 = scmp.ge.s32.totalorder %s32_s22, 2  ;;  %s73_s23 = sadd.s32 1, %s1599_s17 }
   0xb   : > { %p80_p1 = scmp.ne.s32.totalorder %s1599_s17, %s1595_s16  ;;  %p81_p2 = scmp.eq.s32.totalorder %s1611_s20, 0 }
   0xc   : > { %s2157_s22 = smov (%p34_p0, %s32_s22), 0  ;;  %p86_p4 = scmp.ne.s32.totalorder %s1595_s16, %s1591_s15 }
   0xd   : > { %p1687_p3 = por %p81_p2, %p80_p1  ;;  %s70_s25 = ssub.s32 %s1607_s19, %s2157_s22 }
   0xe   : > { %p87_p5 = scmp.eq.s32.totalorder %s1678_s21, 0  ;;  %p71_p6 = scmp.eq.s32.totalorder %s70_s25, 0 }
   0xf   : > { %p172_p7 = scmp.eq.s32.totalorder %s1678_s21, 1  ;;  %p1386_p10 = scmp.lt.s32.totalorder %s1611_s20, 2 }
  0x10   : > { %p1696_p8 = por %p87_p5, %p86_p4  ;;  %s1709_s29 = sand.u32 1, %s1599_s17  }
  0x11   : > { %s1701_s27 = scalar_select %p71_p6, %s1599_s17, %s73_s23  }
  0x12   : > { %s2137_s26 = scalar_select %p1696_p8, 1, 0 }
  0x13   : > { %p1703_p9 = por %p172_p7, %p80_p1  ;;  %s1238_s30 = sshll.u32 %s1607_s19, 13 }
  0x14   : > { %s1213_s5 = sshll.u32 %s1709_s29, 9  ;;  %p1715_p11 = pnand %p1386_p10, %p1687_p3 }
  0x15   : > { %s2138_s28 = scalar_select %p1703_p9, 1, 0 }
  0x16   : > { %s2139_s6 = scalar_select %p1715_p11, 1, 0 }
  0x17   : > { %s236_s7 = sand.u32 1, %s1611_s20   ;;  %s2140_s2 = sld [smem:[#allocation14_spill]] }
  0x18   : > { %s240_s11 = scalar_lea.vmem [#allocation7], %s1213_s5  ;;  %s1732_s13 = scalar_lea.sflag [#allocation8], %s236_s7 }
  0x19   : > { %s247_s12 = sshll.u32 %s240_s11, 4  ;;  %p1738_p0 = pneg %p1715_p11  ;;  %s1729_s12 = int_to_ptr.vmem [resolvable:$true] %s247_s12 }
  0x1d   : > { %s1725_s10 = scalar_lea.hbm %s2140_s2, %s1238_s30  ;;  %s1468_s25 = scalar_lea.hbm %s2140_s2, 16384 }
  0x1e   : > { %s1463_s14 = scalar_lea.hbm %s1725_s10, 8192  ;;  %p1469_p3 = scmp.lt.u32.totalorder %s1725_s10, %s2140_s2 }
  0x1f   : > { %p1464_p13 = scmp.ne.s32.totalorder %s1725_s10, %s1463_s14  ;;  %p1470_p4 = scmp.lt.u32.totalorder %s1468_s25, %s1463_s14 }
  0x20   : > { %p1472_p6 = scmp.lt.u32.totalorder %s1463_s14, %s1725_s10 }
  0x21   : > { %p1466_p1 = pnand %p1738_p0, %p1464_p13  ;;  %p1471_p5 = por %p1470_p4, %p1469_p3 }
  0x23   : > { %p1467_p2 = pneg %p1466_p1  ;;  %p1473_p7 = por %p1472_p6, %p1471_p5 }
  0x25   : > { %p1474_p10 = pnand %p1473_p7, %p1467_p2 }
  0x27   : > { %1477 = shalt.err (!%p1474_p10)
}
  0x28   : > { %s1478_s7 = scalar_lea.vmem %s1729_s12, 8192  ;;  %s1617_s11 = smov [#allocation7]  }
  0x29   : > { %p1479_p13 = scmp.ne.s32.totalorder %s1729_s12, %s1478_s7  ;;  %s1483_s23 = sshll.u32 %s1617_s11, 4  ;;  %s1484_s23 = int_to_ptr.vmem [resolvable:$false] %s1483_s23 }
  0x2a   : > { %s1485_s24 = scalar_lea.vmem %s1484_s23, 16384  ;;  %p1486_p9 = scmp.lt.s32.totalorder %s1729_s12, %s1484_s23 }
  0x2b   : > { %p1481_p1 = pnand %p1479_p13, %p1738_p0  ;;  %p1487_p8 = scmp.lt.s32.totalorder %s1485_s24, %s1478_s7 }
  0x2d   : > { %p1482_p12 = pneg %p1481_p1  ;;  %p1488_p3 = por %p1487_p8, %p1486_p9 }
  0x2f   : > { %p1489_p4 = pnand %p1488_p3, %p1482_p12 }
  0x31   : > { %1492 = shalt.err (!%p1489_p4)
}
  0x32   : > { %s2131_s14 = smov 512   ;;  %s2132_s25 = smov 32  }
  0x33   : > { %1382 = dma.hbm_to_vmem [thread:$0]  (!%p1715_p11), %s1725_s10, 8192, %s1729_s12, %s1732_s13, %s2131_s14, %s2131_s14, %s2132_s25  }
  0x34   : > { %p274_p8 = scmp.lt.s32.totalorder %s1611_s20, 3  ;;  %p2142_p9 = scmp.ge.s32.totalorder %s1611_s20, 1 }
  0x35   : > { %s2144_s1 = sld [smem:[#allocation13_spill]]  ;;  %s219_s23 = scalar_lea.vmem [#allocation5], %s1213_s5 }
  0x36   : > { %p1768_p12 = pnand %p2142_p9, %p274_p8  ;;  %s226_s24 = sshll.u32 %s219_s23, 4  ;;  %s1781_s24 = int_to_ptr.vmem [resolvable:$true] %s226_s24 }
  0x37   : > { %s1219_s10 = sshll.u32 %s1709_s29, 2  ;;  %s216_s12 = scalar_lea.sflag [#allocation6], %s1709_s29 }
  0x38   : > { %s2143_s8 = scalar_select %p1768_p12, 1, 0 }
  0x3b   : > { %s1777_s11 = scalar_lea.hbm %s2144_s1, %s1238_s30  ;;  %s1498_s30 = scalar_lea.hbm %s2144_s1, 16384 }
  0x3c   : > { %s1493_s14 = scalar_lea.hbm %s1777_s11, 8192  ;;  %p1499_p7 = scmp.lt.u32.totalorder %s1777_s11, %s2144_s1 }
  0x3d   : > { %p1494_p2 = scmp.ne.s32.totalorder %s1777_s11, %s1493_s14  ;;  %p1500_p10 = scmp.lt.u32.totalorder %s1498_s30, %s1493_s14 }
  0x3e   : > { %p1502_p1 = scmp.lt.u32.totalorder %s1493_s14, %s1777_s11 }
  0x3f   : > { %p1496_p5 = pnand %p1494_p2, %p1738_p0  ;;  %p1501_p13 = por %p1500_p10, %p1499_p7 }
  0x41   : > { %p1497_p6 = pneg %p1496_p5  ;;  %p1503_p3 = por %p1502_p1, %p1501_p13 }
  0x43   : > { %p1504_p4 = pnand %p1503_p3, %p1497_p6 }
  0x45   : > { %1507 = shalt.err (!%p1504_p4)
}
  0x46   : > { %s1508_s5 = scalar_lea.vmem %s1781_s24, 8192  ;;  %s1620_s25 = smov [#allocation5]  }
  0x47   : > { %p1509_p8 = scmp.ne.s32.totalorder %s1781_s24, %s1508_s5  ;;  %s1513_s23 = sshll.u32 %s1620_s25, 4  ;;  %s1514_s23 = int_to_ptr.vmem [resolvable:$false] %s1513_s23 }
  0x48   : > { %s1515_s2 = scalar_lea.vmem %s1514_s23, 16384  ;;  %p1516_p5 = scmp.lt.s32.totalorder %s1781_s24, %s1514_s23 }
  0x49   : > { %p1511_p9 = pnand %p1509_p8, %p1738_p0  ;;  %p1517_p12 = scmp.lt.s32.totalorder %s1515_s2, %s1508_s5 }
  0x4b   : > { %p1512_p2 = pneg %p1511_p9  ;;  %p1518_p7 = por %p1517_p12, %p1516_p5 }
  0x4d   : > { %p1519_p10 = pnand %p1518_p7, %p1512_p2 }
  0x4f   : > { %1522 = shalt.err (!%p1519_p10)
}
  0x50   : > { %s2145_s14 = smov 32   ;;  %s2146_s9 = smov 512  }
  0x51   : > { %1379 = dma.hbm_to_vmem [thread:$0]  (!%p1715_p11), %s1777_s11, 8192, %s1781_s24, %s216_s12, %s2146_s9, %s2146_s9, %s2145_s14  }
  0x52   : > { %s1240_s30 = sshll.u32 %s1607_s19, 6  ;;  %s261_s23 = scalar_lea.vmem [#allocation9], %s1219_s10 }
  0x53   : > { %s1815_s5 = scalar_lea.hbm %s2128_s3, %s1240_s30  ;;  %s269_s2 = sshll.u32 %s261_s23, 4  ;;  %s270_s2 = int_to_ptr.vmem [resolvable:$true] %s269_s2 }
  0x54   : > { %s1523_s1 = scalar_lea.hbm %s1815_s5, 64  ;;  %s1528_s12 = scalar_lea.hbm %s2128_s3, 128 }
  0x55   : > { %p1524_p12 = scmp.ne.s32.totalorder %s1815_s5, %s1523_s1  ;;  %p1529_p1 = scmp.lt.u32.totalorder %s1815_s5, %s2128_s3 }
  0x56   : > { %p1530_p3 = scmp.lt.u32.totalorder %s1528_s12, %s1523_s1  ;;  %p1532_p8 = scmp.lt.u32.totalorder %s1523_s1, %s1815_s5 }
  0x57   : > { %p1526_p6 = pnand %p1524_p12, %p1738_p0 }
  0x58   : > { %p1531_p4 = por %p1530_p3, %p1529_p1 }
  0x59   : > { %p1527_p13 = pneg %p1526_p6 }
  0x5a   : > { %p1533_p9 = por %p1532_p8, %p1531_p4 }
  0x5c   : > { %p1534_p2 = pnand %p1533_p9, %p1527_p13 }
  0x5e   : > { %1537 = shalt.err (!%p1534_p2)
}
  0x5f   : > { %s1538_s29 = scalar_lea.vmem %s270_s2, 64  ;;  %s1621_s10 = smov [#allocation9]  }
  0x60   : > { %p1539_p5 = scmp.ne.s32.totalorder %s270_s2, %s1538_s29  ;;  %s1543_s30 = sshll.u32 %s1621_s10, 4  ;;  %s1544_s30 = int_to_ptr.vmem [resolvable:$false] %s1543_s30 }
  0x61   : > { %s1545_s7 = scalar_lea.vmem %s1544_s30, 128  ;;  %p1546_p12 = scmp.lt.s32.totalorder %s270_s2, %s1544_s30 }
  0x62   : > { %p1541_p7 = pnand %p1539_p5, %p1738_p0  ;;  %p1547_p6 = scmp.lt.s32.totalorder %s1545_s7, %s1538_s29 }
  0x64   : > { %p1542_p10 = pneg %p1541_p7  ;;  %p1548_p11 = por %p1547_p6, %p1546_p12 }
  0x66   : > { %p1549_p1 = pnand %p1548_p11, %p1542_p10 }
  0x68   : > { %1552 = shalt.err (!%p1549_p1)
}
  0x69   : > { %p2147_p3 = scmp.ne.s32.totalorder %s2139_s6, 0  ;;  %p2148_p13 = scmp.ne.s32.totalorder %s2143_s8, 0 }
  0x6a   : > { %s1840_s1 = sand.u32 (!%p2148_p13), 1, %s1595_s16   ;;  %p2149_p11 = scmp.ne.s32.totalorder (!%p2148_p13), %s2137_s26, 0 }
  0x6b   : > { %1385 = dma.hbm_to_vmem [thread:$0]  (!%p2147_p3), %s1815_s5, 64, %s270_s2, %s1732_s13  }
  0x6c   : > { %278 = sbr.rel (%p2148_p13) target bundleno = 708 (0x2c4), region = 36  ;;  %s1223_s15 = sshll.u32 (!%p2148_p13), %s1840_s1, 9 }
  0x6d   : > { %s281_s25 = scalar_lea.sflag (!%p2148_p13), [#allocation6], %s1840_s1  ;;  %s1844_s23 = scalar_lea.vmem (!%p2148_p13), [#allocation5], %s1223_s15 }
  0x73   : > { %1582 = dma.done.wait (%p2149_p11), %s281_s25, 8192  }
  0x74   : > { %1584 = vsyncadd (%p2149_p11), %s281_s25, 4294959104  ;;  %s289_s6 = sand.u32 1, %s1678_s21   ;;  %s1851_s8 = scalar_lea.vmem [#allocation7], %s1223_s15 }
  0x75   : > { %s290_s13 = scalar_lea.sflag [#allocation8], %s289_s6 }
  0x76   : > { %1586 = dma.done.wait (%p2149_p11), %s290_s13, 8256  }
  0x77   : > { %1588 = vsyncadd (%p2149_p11), %s290_s13, 4294959040  ;;  %s1226_s5 = sshll.u32 %s1840_s1, 6  ;;  %v1622_v0 = vmov 0.0   ;;  %v379_v1 = vld [vmem:[%s1844_s23 + $0x8] sm:$0xff]  ;;  %v381_v3 = vld [vmem:[%s1844_s23 + $0x18] sm:$0xff]  ;;  %s1225_s13 = sshll.u32 %s1840_s1, 2 }
  0x78   : > { %368 = vst [vmem:[#allocation2] sm:$0xff] %v1622_v0  ;;  %369 = vst [vmem:[#allocation3] sm:$0xff] %v1622_v0  ;;  %528 = vmatprep.mubr.f32.mxu0 %v1622_v0  ;;  %641 = vmatprep.mubr.f32.mxu1 %v1622_v0  ;;  %v383_v2 = vld [vmem:[%s1844_s23 + $0x28] sm:$0xff]  ;;  %v385_v5 = vld [vmem:[%s1844_s23 + $0x38] sm:$0xff]  ;;  %s302_s21 = scalar_lea.vmem [#allocation9], %s1225_s13  ;;  %s2007_s26 = scalar_lea.vmem [#allocation10], %s1226_s5 }
  0x79   : > { %v1242_v4 = vpack.c.bf16 %v383_v2, %v379_v1  ;;  %v378_v6 = vld [vmem:[%s1844_s23] sm:$0xff]  ;;  %v1274_v8 = vpack.c.bf16 %v385_v5, %v381_v3  ;;  %v380_v10 = vld [vmem:[%s1844_s23 + $0x10] sm:$0xff]  ;;  %v387_v12 = vld [vmem:[%s1844_s23 + $0x48] sm:$0xff]  ;;  %s2009_s2 = smov 0  }
  0x7a   : > { %v382_v7 = vld [vmem:[%s1844_s23 + $0x20] sm:$0xff]  ;;  %v384_v11 = vld [vmem:[%s1844_s23 + $0x30] sm:$0xff]  ;;  %v391_v14 = vld [vmem:[%s1844_s23 + $0x68] sm:$0xff] }
  0x7b   : > { %v1244_v9 = vpack.c.bf16 %v382_v7, %v378_v6  ;;  %1243 = vmatprep.subr.bf16.mxu0 %v1242_v4  ;;  %v1276_v13 = vpack.c.bf16 %v384_v11, %v380_v10  ;;  %v389_v15 = vld [vmem:[%s1844_s23 + $0x58] sm:$0xff]  ;;  %1275 = vmatprep.subr.bf16.mxu1 %v1274_v8  ;;  %v1246_v17 = vpack.c.bf16 %v391_v14, %v387_v12  ;;  %v386_v19 = vld [vmem:[%s1844_s23 + $0x40] sm:$0xff]  ;;  %v388_v21 = vld [vmem:[%s1844_s23 + $0x50] sm:$0xff] }
  0x7c   : > { %v393_v16 = vld [vmem:[%s1844_s23 + $0x78] sm:$0xff]  ;;  %v390_v20 = vld [vmem:[%s1844_s23 + $0x60] sm:$0xff]  ;;  %v392_v23 = vld [vmem:[%s1844_s23 + $0x70] sm:$0xff] }
  0x7d   : > { %1245 = vmatpush1.bf16.msra.mxu0 %v1244_v9  ;;  %v1278_v18 = vpack.c.bf16 %v393_v16, %v389_v15  ;;  %1277 = vmatpush1.bf16.msra.mxu1 %v1276_v13  ;;  %v1248_v22 = vpack.c.bf16 %v390_v20, %v386_v19  ;;  %v395_v24 = vld [vmem:[%s1844_s23 + $0x88] sm:$0xff]  ;;  %v1280_v26 = vpack.c.bf16 %v392_v23, %v388_v21  ;;  %v397_v28 = vld [vmem:[%s1844_s23 + $0x98] sm:$0xff]  ;;  %v394_v30 = vld [vmem:[%s1844_s23 + $0x80] sm:$0xff] }
  0x7e   : > { %v399_v25 = vld [vmem:[%s1844_s23 + $0xa8] sm:$0xff]  ;;  %1247 = vmatprep.subr.bf16.mxu0 %v1246_v17  ;;  %v401_v29 = vld [vmem:[%s1844_s23 + $0xb8] sm:$0xff]  ;;  %v398_v32 = vld [vmem:[%s1844_s23 + $0xa0] sm:$0xff] }
  0x7f   : > { %1279 = vmatprep.subr.bf16.mxu1 %v1278_v18  ;;  %v1250_v27 = vpack.c.bf16 %v399_v25, %v395_v24  ;;  %v1282_v31 = vpack.c.bf16 %v401_v29, %v397_v28  ;;  %v396_v33 = vld [vmem:[%s1844_s23 + $0x90] sm:$0xff]  ;;  %v1252_v35 = vpack.c.bf16 %v398_v32, %v394_v30  ;;  %v403_v36 = vld [vmem:[%s1844_s23 + $0xc8] sm:$0xff]  ;;  %v405_v38 = vld [vmem:[%s1844_s23 + $0xd8] sm:$0xff] }
  0x80   : > { %v400_v34 = vld [vmem:[%s1844_s23 + $0xb0] sm:$0xff]  ;;  %v407_v37 = vld [vmem:[%s1844_s23 + $0xe8] sm:$0xff]  ;;  %v409_v41 = vld [vmem:[%s1844_s23 + $0xf8] sm:$0xff] }
  0x81   : > { %1249 = vmatpush1.bf16.msra.mxu0 %v1248_v22  ;;  %1281 = vmatpush1.bf16.msra.mxu1 %v1280_v26  ;;  %v1284_v39 = vpack.c.bf16 %v400_v34, %v396_v33  ;;  %v1254_v40 = vpack.c.bf16 %v407_v37, %v403_v36  ;;  %v402_v42 = vld [vmem:[%s1844_s23 + $0xc0] sm:$0xff]  ;;  %v1286_v44 = vpack.c.bf16 %v409_v41, %v405_v38  ;;  %v404_v45 = vld [vmem:[%s1844_s23 + $0xd0] sm:$0xff]  ;;  %v411_v47 = vld [vmem:[%s1844_s23 + $0x108] sm:$0xff] }
  0x82   : > { %1251 = vmatprep.subr.bf16.mxu0 %v1250_v27  ;;  %v406_v43 = vld [vmem:[%s1844_s23 + $0xe0] sm:$0xff]  ;;  %1283 = vmatprep.subr.bf16.mxu1 %v1282_v31  ;;  %v408_v46 = vld [vmem:[%s1844_s23 + $0xf0] sm:$0xff]  ;;  %v415_v48 = vld [vmem:[%s1844_s23 + $0x128] sm:$0xff] }
  0x83   : > { %v413_v49 = vld [vmem:[%s1844_s23 + $0x118] sm:$0xff]  ;;  %v1256_v51 = vpack.c.bf16 %v406_v43, %v402_v42  ;;  %v1288_v52 = vpack.c.bf16 %v408_v46, %v404_v45  ;;  %v1258_v53 = vpack.c.bf16 %v415_v48, %v411_v47  ;;  %v410_v54 = vld [vmem:[%s1844_s23 + $0x100] sm:$0xff]  ;;  %v412_v56 = vld [vmem:[%s1844_s23 + $0x110] sm:$0xff]  ;;  %v444_v42 = vlaneseq }
  0x84   : > { %v417_v50 = vld [vmem:[%s1844_s23 + $0x138] sm:$0xff]  ;;  %v414_v55 = vld [vmem:[%s1844_s23 + $0x120] sm:$0xff]  ;;  %v416_v58 = vld [vmem:[%s1844_s23 + $0x130] sm:$0xff] }
  0x85   : > { %1253 = vmatpush1.bf16.msra.mxu0 %v1252_v35  ;;  %1285 = vmatpush1.bf16.msra.mxu1 %v1284_v39  ;;  %v1290_v57 = vpack.c.bf16 %v417_v50, %v413_v49  ;;  %v419_v59 = vld [vmem:[%s1844_s23 + $0x148] sm:$0xff]  ;;  %v421_v61 = vld [vmem:[%s1844_s23 + $0x158] sm:$0xff]  ;;  %v1260_v63 = vpack.c.bf16 %v414_v55, %v410_v54  ;;  %v1292_v1 = vpack.c.bf16 %v416_v58, %v412_v56  ;;  %v418_v3 = vld [vmem:[%s1844_s23 + $0x140] sm:$0xff]  ;;  %v445_v43 = vshrl.u32 %v444_v42, 7 }
  0x86   : > { %1255 = vmatprep.subr.bf16.mxu0 %v1254_v40  ;;  %1287 = vmatprep.subr.bf16.mxu1 %v1286_v44  ;;  %v423_v60 = vld [vmem:[%s1844_s23 + $0x168] sm:$0xff]  ;;  %v425_v62 = vld [vmem:[%s1844_s23 + $0x178] sm:$0xff]  ;;  %v422_v4 = vld [vmem:[%s1844_s23 + $0x160] sm:$0xff] }
  0x87   : > { %v1262_v2 = vpack.c.bf16 %v423_v60, %v419_v59  ;;  %v420_v5 = vld [vmem:[%s1844_s23 + $0x150] sm:$0xff]  ;;  %v1294_v6 = vpack.c.bf16 %v425_v62, %v421_v61  ;;  %v427_v8 = vld [vmem:[%s1844_s23 + $0x188] sm:$0xff]  ;;  %v429_v10 = vld [vmem:[%s1844_s23 + $0x198] sm:$0xff]  ;;  %v1264_v12 = vpack.c.bf16 %v422_v4, %v418_v3  ;;  %v446_v44 = vsub.s32 0, %v445_v43 }
  0x88   : > { %v424_v7 = vld [vmem:[%s1844_s23 + $0x170] sm:$0xff]  ;;  %v431_v9 = vld [vmem:[%s1844_s23 + $0x1a8] sm:$0xff]  ;;  %v433_v11 = vld [vmem:[%s1844_s23 + $0x1b8] sm:$0xff]  ;;  %v454_v46 = vsub.s32 2, %v445_v43  ;;  %v450_v47 = vsub.s32 1, %v445_v43  ;;  %v458_v48 = vsub.s32 3, %v445_v43 }
  0x89   : > { %1257 = vmatpush1.bf16.msra.mxu0 %v1256_v51  ;;  %1289 = vmatpush1.bf16.msra.mxu1 %v1288_v52  ;;  %v1296_v13 = vpack.c.bf16 %v424_v7, %v420_v5  ;;  %v1266_v14 = vpack.c.bf16 %v431_v9, %v427_v8  ;;  %v426_v15 = vld [vmem:[%s1844_s23 + $0x180] sm:$0xff]  ;;  %v428_v17 = vld [vmem:[%s1844_s23 + $0x190] sm:$0xff]  ;;  %v1298_v18 = vpack.c.bf16 %v433_v11, %v429_v10  ;;  %v435_v20 = vld [vmem:[%s1844_s23 + $0x1c8] sm:$0xff] }
  0x8a   : > { %1259 = vmatprep.subr.bf16.mxu0 %v1258_v53  ;;  %1291 = vmatprep.subr.bf16.mxu1 %v1290_v57  ;;  %v430_v16 = vld [vmem:[%s1844_s23 + $0x1a0] sm:$0xff]  ;;  %v432_v19 = vld [vmem:[%s1844_s23 + $0x1b0] sm:$0xff]  ;;  %v439_v21 = vld [vmem:[%s1844_s23 + $0x1e8] sm:$0xff] }
  0x8b   : > { %v437_v22 = vld [vmem:[%s1844_s23 + $0x1d8] sm:$0xff]  ;;  %v1268_v24 = vpack.c.bf16 %v430_v16, %v426_v15  ;;  %v1300_v25 = vpack.c.bf16 %v432_v19, %v428_v17  ;;  %v1270_v26 = vpack.c.bf16 %v439_v21, %v435_v20  ;;  %v434_v27 = vld [vmem:[%s1844_s23 + $0x1c0] sm:$0xff]  ;;  %v436_v30 = vld [vmem:[%s1844_s23 + $0x1d0] sm:$0xff] }
  0x8c   : > { %v441_v23 = vld [vmem:[%s1844_s23 + $0x1f8] sm:$0xff]  ;;  %v438_v28 = vld [vmem:[%s1844_s23 + $0x1e0] sm:$0xff]  ;;  %v440_v31 = vld [vmem:[%s1844_s23 + $0x1f0] sm:$0xff] }
  0x8d   : > { %1261 = vmatpush1.bf16.msra.mxu0 %v1260_v63  ;;  %1293 = vmatpush1.bf16.msra.mxu1 %v1292_v1  ;;  %v1302_v29 = vpack.c.bf16 %v441_v23, %v437_v22  ;;  %v1272_v32 = vpack.c.bf16 %v438_v28, %v434_v27  ;;  %v1304_v33 = vpack.c.bf16 %v440_v31, %v436_v30  ;;  %v370_v34 = vld [vmem:[%s2125_s0] sm:$0xff]  ;;  %v371_v35 = vld [vmem:[%s2125_s0 + $0x8] sm:$0xff]  ;;  %v372_v36 = vld [vmem:[%s2125_s0 + $0x10] sm:$0xff] }
  0x8e   : > { %1263 = vmatprep.subr.bf16.mxu0 %v1262_v2  ;;  %1295 = vmatprep.subr.bf16.mxu1 %v1294_v6  ;;  %v373_v37 = vld [vmem:[%s2125_s0 + $0x18] sm:$0xff]  ;;  %v374_v38 = vld [vmem:[%s2125_s0 + $0x20] sm:$0xff]  ;;  %v375_v39 = vld [vmem:[%s2125_s0 + $0x28] sm:$0xff] }
  0x8f   : > { %v376_v40 = vld [vmem:[%s2125_s0 + $0x30] sm:$0xff]  ;;  %v377_v41 = vld [vmem:[%s2125_s0 + $0x38] sm:$0xff] }
  0x90   : > { %v442_v45 = vld [vmem:[%s302_s21] sm:$0xf] }
  0x91   : > { %1265 = vmatpush1.bf16.msra.mxu0 %v1264_v12  ;;  %1297 = vmatpush1.bf16.msra.mxu1 %v1296_v13  ;;  %v1965_v49 = vrot.slane %v442_v45, %v446_v44  ;;  %v1967_v50 = vrot.slane %v442_v45, %v454_v46  ;;  %v1969_v51 = vrot.slane %v442_v45, %v450_v47 }
  0x92   : > { %1267 = vmatprep.subr.bf16.mxu0 %v1266_v14  ;;  %1299 = vmatprep.subr.bf16.mxu1 %v1298_v18  ;;  %v1971_v52 = vrot.slane %v442_v45, %v458_v48 }
  0x95   : > { %1269 = vmatpush1.bf16.msra.mxu0 %v1268_v24  ;;  %1301 = vmatpush1.bf16.msra.mxu1 %v1300_v25 }
  0x96   : > { %1271 = vmatprep.subr.bf16.mxu0 %v1270_v26  ;;  %1303 = vmatprep.subr.bf16.mxu1 %v1302_v29 }
  0x99   : > { %1273 = vmatpush1.bf16.msra.mxu0 %v1272_v32  ;;  %1305 = vmatpush1.bf16.msra.mxu1 %v1304_v33 }
  0x9c   : > { %529 = vmatmul.mubr.f32.vlgmr.msra.gmra.mrb[0].mxu0 %v370_v34  ;;  %642 = vmatmul.mubr.f32.vlgmr.msra.gmra.mrb[0].mxu1 %v370_v34 }
  0x9d   : > { %534 = vmatprep.mubr.f32.mxu0 %v1622_v0  ;;  %647 = vmatprep.mubr.f32.mxu1 %v1622_v0 }
  0xa0   : > { %535 = vmatmul.mubr.f32.gmra.mrb[2].mxu0 %v371_v35  ;;  %648 = vmatmul.mubr.f32.gmra.mrb[2].mxu1 %v371_v35 }
  0xa1   : > { %540 = vmatprep.mubr.f32.mxu0 %v1622_v0  ;;  %653 = vmatprep.mubr.f32.mxu1 %v1622_v0 }
  0xa4   : > { %541 = vmatmul.mubr.f32.gmra.mrb[4].mxu0 %v372_v36  ;;  %654 = vmatmul.mubr.f32.gmra.mrb[4].mxu1 %v372_v36 }
  0xa5   : > { %546 = vmatprep.mubr.f32.mxu0 %v1622_v0  ;;  %659 = vmatprep.mubr.f32.mxu1 %v1622_v0 }
  0xa8   : > { %547 = vmatmul.mubr.f32.gmra.mrb[6].mxu0 %v373_v37  ;;  %660 = vmatmul.mubr.f32.gmra.mrb[6].mxu1 %v373_v37 }
  0xa9   : > { %552 = vmatprep.mubr.f32.mxu0 %v1622_v0  ;;  %665 = vmatprep.mubr.f32.mxu1 %v1622_v0 }
  0xac   : > { %553 = vmatmul.mubr.f32.gmra.mrb[8].mxu0 %v374_v38  ;;  %666 = vmatmul.mubr.f32.gmra.mrb[8].mxu1 %v374_v38 }
  0xad   : > { %558 = vmatprep.mubr.f32.mxu0 %v1622_v0  ;;  %671 = vmatprep.mubr.f32.mxu1 %v1622_v0 }
  0xb0   : > { %559 = vmatmul.mubr.f32.gmra.mrb[10].mxu0 %v375_v39  ;;  %672 = vmatmul.mubr.f32.gmra.mrb[10].mxu1 %v375_v39 }
  0xb1   : > { %564 = vmatprep.mubr.f32.mxu0 %v1622_v0  ;;  %677 = vmatprep.mubr.f32.mxu1 %v1622_v0 }
  0xb4   : > { %565 = vmatmul.mubr.f32.gmra.mrb[12].mxu0 %v376_v40  ;;  %678 = vmatmul.mubr.f32.gmra.mrb[12].mxu1 %v376_v40 }
  0xb5   : > { %570 = vmatprep.mubr.f32.mxu0 %v1622_v0  ;;  %683 = vmatprep.mubr.f32.mxu1 %v1622_v0 }
  0xb8   : > { %571 = vmatmul.mubr.f32.gmra.mrb[14].mxu0 %v377_v41  ;;  %684 = vmatmul.mubr.f32.gmra.mrb[14].mxu1 %v377_v41 }
 0x16f   : > { %v530_v0 = vpop.f32.mrb[0].mxu0  ;;  %v643_v54 = vpop.f32.mrb[0].mxu1 }
 0x170   : > { %v531_v53 = vadd.f32 %v530_v0, %v1965_v49  ;;  %v532_v55 = vpop.f32.mrb[1].mxu0  ;;  %v644_v56 = vadd.f32 %v643_v54, %v1967_v50  ;;  %v645_v58 = vpop.f32.mrb[1].mxu1 }
 0x171   : > { %v533_v57 = vadd.f32 %v532_v55, %v1969_v51  ;;  %v646_v59 = vadd.f32 %v645_v58, %v1971_v52 }
 0x172   : > { %690 = vst [vmem:[#allocation4] sm:$0xff] %v531_v53  ;;  %692 = vst [vmem:[#allocation4 + $0x10] sm:$0xff] %v644_v56 }
 0x173   : > { %691 = vst [vmem:[#allocation4 + $0x8] sm:$0xff] %v533_v57  ;;  %v536_v60 = vpop.f32.mrb[2].mxu0  ;;  %693 = vst [vmem:[#allocation4 + $0x18] sm:$0xff] %v646_v59  ;;  %v649_v62 = vpop.f32.mrb[2].mxu1 }
 0x174   : > { %v537_v61 = vadd.f32 %v536_v60, %v1965_v49  ;;  %v538_v63 = vpop.f32.mrb[3].mxu0  ;;  %v650_v1 = vadd.f32 %v649_v62, %v1967_v50  ;;  %v651_v3 = vpop.f32.mrb[3].mxu1 }
 0x175   : > { %v539_v2 = vadd.f32 %v538_v63, %v1969_v51  ;;  %v652_v4 = vadd.f32 %v651_v3, %v1971_v52 }
 0x176   : > { %694 = vst [vmem:[#allocation4 + $0x20] sm:$0xff] %v537_v61  ;;  %696 = vst [vmem:[#allocation4 + $0x30] sm:$0xff] %v650_v1 }
 0x177   : > { %695 = vst [vmem:[#allocation4 + $0x28] sm:$0xff] %v539_v2  ;;  %v542_v5 = vpop.f32.mrb[4].mxu0  ;;  %697 = vst [vmem:[#allocation4 + $0x38] sm:$0xff] %v652_v4  ;;  %v655_v7 = vpop.f32.mrb[4].mxu1 }
 0x178   : > { %v543_v6 = vadd.f32 %v542_v5, %v1965_v49  ;;  %v544_v8 = vpop.f32.mrb[5].mxu0  ;;  %v656_v9 = vadd.f32 %v655_v7, %v1967_v50  ;;  %v657_v11 = vpop.f32.mrb[5].mxu1 }
 0x179   : > { %v545_v10 = vadd.f32 %v544_v8, %v1969_v51  ;;  %v658_v12 = vadd.f32 %v657_v11, %v1971_v52 }
 0x17a   : > { %698 = vst [vmem:[#allocation4 + $0x40] sm:$0xff] %v543_v6  ;;  %700 = vst [vmem:[#allocation4 + $0x50] sm:$0xff] %v656_v9 }
 0x17b   : > { %699 = vst [vmem:[#allocation4 + $0x48] sm:$0xff] %v545_v10  ;;  %v548_v13 = vpop.f32.mrb[6].mxu0  ;;  %701 = vst [vmem:[#allocation4 + $0x58] sm:$0xff] %v658_v12  ;;  %v661_v15 = vpop.f32.mrb[6].mxu1 }
 0x17c   : > { %v549_v14 = vadd.f32 %v548_v13, %v1965_v49  ;;  %v550_v16 = vpop.f32.mrb[7].mxu0  ;;  %v662_v17 = vadd.f32 %v661_v15, %v1967_v50  ;;  %v663_v19 = vpop.f32.mrb[7].mxu1 }
 0x17d   : > { %v551_v18 = vadd.f32 %v550_v16, %v1969_v51  ;;  %v664_v20 = vadd.f32 %v663_v19, %v1971_v52 }
 0x17e   : > { %702 = vst [vmem:[#allocation4 + $0x60] sm:$0xff] %v549_v14  ;;  %704 = vst [vmem:[#allocation4 + $0x70] sm:$0xff] %v662_v17 }
 0x17f   : > { %703 = vst [vmem:[#allocation4 + $0x68] sm:$0xff] %v551_v18  ;;  %v554_v21 = vpop.f32.mrb[8].mxu0  ;;  %705 = vst [vmem:[#allocation4 + $0x78] sm:$0xff] %v664_v20  ;;  %v667_v23 = vpop.f32.mrb[8].mxu1 }
 0x180   : > { %v555_v22 = vadd.f32 %v554_v21, %v1965_v49  ;;  %v556_v24 = vpop.f32.mrb[9].mxu0  ;;  %v668_v25 = vadd.f32 %v667_v23, %v1967_v50  ;;  %v669_v27 = vpop.f32.mrb[9].mxu1 }
 0x181   : > { %v557_v26 = vadd.f32 %v556_v24, %v1969_v51  ;;  %v670_v28 = vadd.f32 %v669_v27, %v1971_v52 }
 0x182   : > { %706 = vst [vmem:[#allocation4 + $0x80] sm:$0xff] %v555_v22  ;;  %708 = vst [vmem:[#allocation4 + $0x90] sm:$0xff] %v668_v25 }
 0x183   : > { %707 = vst [vmem:[#allocation4 + $0x88] sm:$0xff] %v557_v26  ;;  %v560_v29 = vpop.f32.mrb[10].mxu0  ;;  %709 = vst [vmem:[#allocation4 + $0x98] sm:$0xff] %v670_v28  ;;  %v673_v31 = vpop.f32.mrb[10].mxu1 }
 0x184   : > { %v561_v30 = vadd.f32 %v560_v29, %v1965_v49  ;;  %v562_v32 = vpop.f32.mrb[11].mxu0  ;;  %v674_v33 = vadd.f32 %v673_v31, %v1967_v50  ;;  %v675_v35 = vpop.f32.mrb[11].mxu1 }
 0x185   : > { %v563_v34 = vadd.f32 %v562_v32, %v1969_v51  ;;  %v676_v36 = vadd.f32 %v675_v35, %v1971_v52 }
 0x186   : > { %710 = vst [vmem:[#allocation4 + $0xa0] sm:$0xff] %v561_v30  ;;  %712 = vst [vmem:[#allocation4 + $0xb0] sm:$0xff] %v674_v33 }
 0x187   : > { %711 = vst [vmem:[#allocation4 + $0xa8] sm:$0xff] %v563_v34  ;;  %v566_v37 = vpop.f32.mrb[12].mxu0  ;;  %713 = vst [vmem:[#allocation4 + $0xb8] sm:$0xff] %v676_v36  ;;  %v679_v39 = vpop.f32.mrb[12].mxu1 }
 0x188   : > { %v567_v38 = vadd.f32 %v566_v37, %v1965_v49  ;;  %v568_v40 = vpop.f32.mrb[13].mxu0  ;;  %v680_v41 = vadd.f32 %v679_v39, %v1967_v50  ;;  %v681_v43 = vpop.f32.mrb[13].mxu1 }
 0x189   : > { %v569_v42 = vadd.f32 %v568_v40, %v1969_v51  ;;  %v682_v44 = vadd.f32 %v681_v43, %v1971_v52 }
 0x18a   : > { %714 = vst [vmem:[#allocation4 + $0xc0] sm:$0xff] %v567_v38  ;;  %716 = vst [vmem:[#allocation4 + $0xd0] sm:$0xff] %v680_v41 }
 0x18b   : > { %715 = vst [vmem:[#allocation4 + $0xc8] sm:$0xff] %v569_v42  ;;  %v572_v45 = vpop.f32.mrb[14].mxu0  ;;  %717 = vst [vmem:[#allocation4 + $0xd8] sm:$0xff] %v682_v44  ;;  %v685_v47 = vpop.f32.mrb[14].mxu1 }
 0x18c   : > { %v573_v46 = vadd.f32 %v572_v45, %v1965_v49  ;;  %v574_v48 = vpop.f32.mrb[15].mxu0  ;;  %v686_v0 = vadd.f32 %v685_v47, %v1967_v50  ;;  %v687_v54 = vpop.f32.mrb[15].mxu1 }
 0x18d   : > { %v575_v53 = vadd.f32 %v574_v48, %v1969_v51  ;;  %v688_v55 = vadd.f32 %v687_v54, %v1971_v52 }
 0x18e   : > { %718 = vst [vmem:[#allocation4 + $0xe0] sm:$0xff] %v573_v46  ;;  %720 = vst [vmem:[#allocation4 + $0xf0] sm:$0xff] %v686_v0 }
 0x18f   : > { %719 = vst [vmem:[#allocation4 + $0xe8] sm:$0xff] %v575_v53  ;;  %721 = vst [vmem:[#allocation4 + $0xf8] sm:$0xff] %v688_v55 }
 0x190 LB: >> { %v752_v49 = vld [vmem:[%s1851_s8 + $0x8] sm:$0xff]  ;;  %v751_v51 = vld [vmem:[%s1851_s8] sm:$0xff]  ;;  %v1623_v59 = vmov 0.0   ;;  %v754_v8 = vld [vmem:[%s1851_s8 + $0x18] sm:$0xff]  ;;  %s1227_s1 = sshll.u32 %s1615_s2, 1  ;;  %s1615_s2 = sphi %s2009_s2, %s731_s2  }
 0x191   : >> { %v756_v50 = vld [vmem:[%s1851_s8 + $0x28] sm:$0xff]  ;;  %v755_v56 = vld [vmem:[%s1851_s8 + $0x20] sm:$0xff]  ;;  %879 = vmatprep.mubr.f32.mxu0 %v1623_v59  ;;  %950 = vmatprep.mubr.f32.mxu1 %v1623_v59  ;;  %v758_v9 = vld [vmem:[%s1851_s8 + $0x38] sm:$0xff]  ;;  %s733_s5 = ssub.s32 7, %s1227_s1 }
 0x192   : >> { %v1306_v52 = vpack.c.bf16 %v756_v50, %v752_v49  ;;  %v760_v57 = vld [vmem:[%s1851_s8 + $0x48] sm:$0xff]  ;;  %v1308_v60 = vpack.c.bf16 %v755_v56, %v751_v51  ;;  %v759_v62 = vld [vmem:[%s1851_s8 + $0x40] sm:$0xff]  ;;  %v1338_v11 = vpack.c.bf16 %v758_v9, %v754_v8  ;;  %v753_v12 = vld [vmem:[%s1851_s8 + $0x10] sm:$0xff]  ;;  %s734_s11 = smul.u32 %s1603_s18, %s733_s5 }
 0x193   : >> { %v764_v58 = vld [vmem:[%s1851_s8 + $0x68] sm:$0xff]  ;;  %v763_v63 = vld [vmem:[%s1851_s8 + $0x60] sm:$0xff]  ;;  %v757_v13 = vld [vmem:[%s1851_s8 + $0x30] sm:$0xff] }
 0x194   : >> { %v1310_v61 = vpack.c.bf16 %v764_v58, %v760_v57  ;;  %v768_v1 = vld [vmem:[%s1851_s8 + $0x88] sm:$0xff]  ;;  %1307 = vmatprep.subr.bf16.mxu0 %v1306_v52  ;;  %v1312_v3 = vpack.c.bf16 %v763_v63, %v759_v62  ;;  %v767_v4 = vld [vmem:[%s1851_s8 + $0x80] sm:$0xff]  ;;  %v1340_v14 = vpack.c.bf16 %v757_v13, %v753_v12  ;;  %1339 = vmatprep.subr.bf16.mxu1 %v1338_v11  ;;  %v762_v16 = vld [vmem:[%s1851_s8 + $0x58] sm:$0xff]  ;;  %s2081_s24 = sadd.s32 %s1615_s2, %s734_s11  ;;  %s731_s2 = sadd.s32 1, %s1615_s2  }
 0x195   : >> { %v772_v2 = vld [vmem:[%s1851_s8 + $0xa8] sm:$0xff]  ;;  %1309 = vmatpush1.bf16.msra.mxu0 %v1308_v60  ;;  %v771_v5 = vld [vmem:[%s1851_s8 + $0xa0] sm:$0xff]  ;;  %v766_v17 = vld [vmem:[%s1851_s8 + $0x78] sm:$0xff]  ;;  %s1228_s12 = sshll.u32 %s2081_s24, 3  ;;  %p738_p0 = scmp.lt.s32.totalorder %s2081_s24, 8 }
 0x196   : >> { %1311 = vmatprep.subr.bf16.mxu0 %v1310_v61  ;;  %v1314_v6 = vpack.c.bf16 %v772_v2, %v768_v1  ;;  %v776_v7 = vld [vmem:[%s1851_s8 + $0xc8] sm:$0xff]  ;;  %v1316_v15 = vpack.c.bf16 %v771_v5, %v767_v4  ;;  %v761_v18 = vld [vmem:[%s1851_s8 + $0x50] sm:$0xff]  ;;  %v775_v20 = vld [vmem:[%s1851_s8 + $0xc0] sm:$0xff]  ;;  %1341 = vmatpush1.bf16.msra.mxu1 %v1340_v14  ;;  %v1342_v22 = vpack.c.bf16 %v766_v17, %v762_v16  ;;  %s742_s14 = sshra.s32 %s1228_s12, 3  ;;  %s992_s30 = scalar_lea.vmem %s2007_s26, %s1228_s12 [#allocation10] }
 0x197   : >> { %v780_v10 = vld [vmem:[%s1851_s8 + $0xe8] sm:$0xff]  ;;  %v779_v21 = vld [vmem:[%s1851_s8 + $0xe0] sm:$0xff]  ;;  %v765_v23 = vld [vmem:[%s1851_s8 + $0x70] sm:$0xff]  ;;  %s1241_s9 = sshll.u32 %s742_s14, 5  ;;  %p728_p4 = scmp.ge.s32.totalorder %s731_s2, 8  }
 0x198   : >> { %v1318_v19 = vpack.c.bf16 %v780_v10, %v776_v7  ;;  %v784_v24 = vld [vmem:[%s1851_s8 + $0x108] sm:$0xff]  ;;  %v1344_v26 = vpack.c.bf16 %v765_v23, %v761_v18  ;;  %v770_v27 = vld [vmem:[%s1851_s8 + $0x98] sm:$0xff]  ;;  %1343 = vmatprep.subr.bf16.mxu1 %v1342_v22  ;;  %v769_v29 = vld [vmem:[%s1851_s8 + $0x90] sm:$0xff]  ;;  %v1320_v31 = vpack.c.bf16 %v779_v21, %v775_v20  ;;  %s746_s29 = scalar_lea.vmem [#allocation4], %s1241_s9  ;;  %p2150_p8 = scmp.ne.s32.totalorder (%p728_p4), %s2138_s28, 0 }
 0x199   : >> { %1313 = vmatpush1.bf16.msra.mxu0 %v1312_v3  ;;  %v788_v25 = vld [vmem:[%s1851_s8 + $0x128] sm:$0xff]  ;;  %v774_v28 = vld [vmem:[%s1851_s8 + $0xb8] sm:$0xff]  ;;  %v773_v30 = vld [vmem:[%s1851_s8 + $0xb0] sm:$0xff]  ;;  %s985_s10 = scalar_select %p738_p0, 1, 0 }
 0x19a   : >> { %1315 = vmatprep.subr.bf16.mxu0 %v1314_v6  ;;  %v783_v32 = vld [vmem:[%s1851_s8 + $0x100] sm:$0xff]  ;;  %v1346_v34 = vpack.c.bf16 %v774_v28, %v770_v27  ;;  %v1322_v35 = vpack.c.bf16 %v788_v25, %v784_v24  ;;  %1345 = vmatpush1.bf16.msra.mxu1 %v1344_v26  ;;  %v792_v36 = vld [vmem:[%s1851_s8 + $0x148] sm:$0xff]  ;;  %v1348_v37 = vpack.c.bf16 %v773_v30, %v769_v29  ;;  %v778_v38 = vld [vmem:[%s1851_s8 + $0xd8] sm:$0xff] }
 0x19b   : >> { %v787_v33 = vld [vmem:[%s1851_s8 + $0x120] sm:$0xff]  ;;  %v782_v39 = vld [vmem:[%s1851_s8 + $0xf8] sm:$0xff]  ;;  %v796_v40 = vld [vmem:[%s1851_s8 + $0x168] sm:$0xff] }
 0x19c   : >> { %1347 = vmatprep.subr.bf16.mxu1 %v1346_v34  ;;  %v1350_v41 = vpack.c.bf16 %v782_v39, %v778_v38  ;;  %v777_v42 = vld [vmem:[%s1851_s8 + $0xd0] sm:$0xff]  ;;  %v1324_v44 = vpack.c.bf16 %v787_v33, %v783_v32  ;;  %v786_v45 = vld [vmem:[%s1851_s8 + $0x118] sm:$0xff]  ;;  %v1326_v47 = vpack.c.bf16 %v796_v40, %v792_v36  ;;  %v791_v48 = vld [vmem:[%s1851_s8 + $0x140] sm:$0xff] }
 0x19d   : >> { %1317 = vmatpush1.bf16.msra.mxu0 %v1316_v15  ;;  %v781_v43 = vld [vmem:[%s1851_s8 + $0xf0] sm:$0xff]  ;;  %v790_v46 = vld [vmem:[%s1851_s8 + $0x138] sm:$0xff]  ;;  %v795_v0 = vld [vmem:[%s1851_s8 + $0x160] sm:$0xff] }
 0x19e   : >> { %1319 = vmatprep.subr.bf16.mxu0 %v1318_v19  ;;  %1349 = vmatpush1.bf16.msra.mxu1 %v1348_v37  ;;  %v800_v53 = vld [vmem:[%s1851_s8 + $0x188] sm:$0xff]  ;;  %v1352_v54 = vpack.c.bf16 %v781_v43, %v777_v42  ;;  %v1354_v49 = vpack.c.bf16 %v790_v46, %v786_v45  ;;  %v785_v50 = vld [vmem:[%s1851_s8 + $0x110] sm:$0xff]  ;;  %v794_v52 = vld [vmem:[%s1851_s8 + $0x158] sm:$0xff]  ;;  %v1328_v57 = vpack.c.bf16 %v795_v0, %v791_v48  ;;  %v986_v46 = vstv %s985_s10 }
 0x19f   : >> { %v804_v55 = vld [vmem:[%s1851_s8 + $0x1a8] sm:$0xff]  ;;  %1351 = vmatprep.subr.bf16.mxu1 %v1350_v41  ;;  %v789_v51 = vld [vmem:[%s1851_s8 + $0x130] sm:$0xff]  ;;  %v798_v56 = vld [vmem:[%s1851_s8 + $0x178] sm:$0xff]  ;;  %vm987_vm0 = vcmp.eq.s32.totalorder %v986_v46, 1 }
 0x1a0   : >> { %v1330_v58 = vpack.c.bf16 %v804_v55, %v800_v53  ;;  %v799_v59 = vld [vmem:[%s1851_s8 + $0x180] sm:$0xff]  ;;  %v808_v61 = vld [vmem:[%s1851_s8 + $0x1c8] sm:$0xff]  ;;  %v1356_v62 = vpack.c.bf16 %v789_v51, %v785_v50  ;;  %v1358_v1 = vpack.c.bf16 %v798_v56, %v794_v52  ;;  %v793_v2 = vld [vmem:[%s1851_s8 + $0x150] sm:$0xff] }
 0x1a1   : >> { %1321 = vmatpush1.bf16.msra.mxu0 %v1320_v31  ;;  %v803_v60 = vld [vmem:[%s1851_s8 + $0x1a0] sm:$0xff]  ;;  %v812_v63 = vld [vmem:[%s1851_s8 + $0x1e8] sm:$0xff]  ;;  %v797_v3 = vld [vmem:[%s1851_s8 + $0x170] sm:$0xff] }
 0x1a2   : >> { %1323 = vmatprep.subr.bf16.mxu0 %v1322_v35  ;;  %1353 = vmatpush1.bf16.msra.mxu1 %v1352_v54  ;;  %v802_v4 = vld [vmem:[%s1851_s8 + $0x198] sm:$0xff]  ;;  %v1332_v6 = vpack.c.bf16 %v803_v60, %v799_v59  ;;  %v1334_v7 = vpack.c.bf16 %v812_v63, %v808_v61  ;;  %v807_v8 = vld [vmem:[%s1851_s8 + $0x1c0] sm:$0xff]  ;;  %v1360_v10 = vpack.c.bf16 %v797_v3, %v793_v2  ;;  %v801_v12 = vld [vmem:[%s1851_s8 + $0x190] sm:$0xff] }
 0x1a3   : >> { %1355 = vmatprep.subr.bf16.mxu1 %v1354_v49  ;;  %v806_v5 = vld [vmem:[%s1851_s8 + $0x1b8] sm:$0xff]  ;;  %v811_v9 = vld [vmem:[%s1851_s8 + $0x1e0] sm:$0xff]  ;;  %v805_v13 = vld [vmem:[%s1851_s8 + $0x1b0] sm:$0xff] }
 0x1a4   : >> { %v1362_v11 = vpack.c.bf16 %v806_v5, %v802_v4  ;;  %v810_v14 = vld [vmem:[%s1851_s8 + $0x1d8] sm:$0xff]  ;;  %v1336_v16 = vpack.c.bf16 %v811_v9, %v807_v8  ;;  %v1364_v17 = vpack.c.bf16 %v805_v13, %v801_v12  ;;  %v809_v19 = vld [vmem:[%s1851_s8 + $0x1d0] sm:$0xff]  ;;  %v750_v31 = vld [vmem:[%s746_s29 + $0x18] sm:$0xff] }
 0x1a5   : >> { %1325 = vmatpush1.bf16.msra.mxu0 %v1324_v44  ;;  %v814_v15 = vld [vmem:[%s1851_s8 + $0x1f8] sm:$0xff]  ;;  %v813_v20 = vld [vmem:[%s1851_s8 + $0x1f0] sm:$0xff]  ;;  %v749_v35 = vld [vmem:[%s746_s29 + $0x10] sm:$0xff] }
 0x1a6   : >> { %1327 = vmatprep.subr.bf16.mxu0 %v1326_v47  ;;  %1357 = vmatpush1.bf16.msra.mxu1 %v1356_v62  ;;  %v1366_v18 = vpack.c.bf16 %v814_v15, %v810_v14  ;;  %v740_v21 = vld [vmem:[#allocation2] sm:$0xff]  ;;  %v1368_v22 = vpack.c.bf16 %v813_v20, %v809_v19  ;;  %v748_v24 = vld [vmem:[%s746_s29 + $0x8] sm:$0xff] }
 0x1a7   : >> { %1359 = vmatprep.subr.bf16.mxu1 %v1358_v1  ;;  %v747_v23 = vld [vmem:[%s746_s29] sm:$0xff]  ;;  %v741_v44 = vld [vmem:[#allocation3] sm:$0xff] }
 0x1a9   : >> { %1329 = vmatpush1.bf16.msra.mxu0 %v1328_v57 }
 0x1aa   : >> { %1331 = vmatprep.subr.bf16.mxu0 %v1330_v58  ;;  %1361 = vmatpush1.bf16.msra.mxu1 %v1360_v10 }
 0x1ab   : >> { %1363 = vmatprep.subr.bf16.mxu1 %v1362_v11 }
 0x1ad   : >> { %1333 = vmatpush1.bf16.msra.mxu0 %v1332_v6 }
 0x1ae   : >> { %1335 = vmatprep.subr.bf16.mxu0 %v1334_v7  ;;  %1365 = vmatpush1.bf16.msra.mxu1 %v1364_v17 }
 0x1af   : >> { %1367 = vmatprep.subr.bf16.mxu1 %v1366_v18 }
 0x1b1   : >> { %1337 = vmatpush1.bf16.msra.mxu0 %v1336_v16 }
 0x1b2   : >> { %1369 = vmatpush1.bf16.msra.mxu1 %v1368_v22 }
 0x1b4   : >> { %880 = vmatmul.mubr.f32.vlgmr.msra.gmra.mrb[0].mxu0 %v740_v21 }
 0x1b5   : >> { %951 = vmatmul.mubr.f32.vlgmr.msra.gmra.mrb[0].mxu1 %v740_v21 }
 0x287   : >> { %v881_v25 = vpop.f32.mrb[0].mxu0 }
 0x288   : >> { %v957_v26 = vadd.f32 %v881_v25, %v747_v23  ;;  %v883_v27 = vpop.f32.mrb[1].mxu0  ;;  %v952_v32 = vpop.f32.mrb[0].mxu1 }
 0x289   : >> { %v958_v28 = vadd.f32 %v883_v27, %v748_v24  ;;  %v954_v33 = vpop.f32.mrb[1].mxu1  ;;  %v959_v37 = vadd.f32 %v952_v32, %v749_v35 }
 0x28a   : >> { %v1231_v29 = vmul.f32 -1.442695, %v957_v26  ;;  %v960_v34 = vadd.f32 %v954_v33, %v750_v31 }
 0x28b   : >> { %v1232_v30 = vmul.f32 -1.442695, %v958_v28 }
 0x28c   : >> { %1447 = vpow2.f32 %v1231_v29  ;;  %v1233_v36 = vmul.f32 -1.442695, %v960_v34 }
 0x28d   : >> { %1449 = vpow2.f32 %v1232_v30 }
 0x28e   : >> { %1451 = vpow2.f32 %v1233_v36 }
 0x28f   : >> { %1453 = vtanh.f32 %v959_v37 }
 0x296   : >> { %v1448_v38 = vpop.eup %1447 }
 0x297   : >> { %v1450_v39 = vpop.eup %1449  ;;  %v964_v40 = vadd.f32 1.0, %v1448_v38 }
 0x298   : >> { %v970_v41 = vadd.f32 1.0, %v1450_v39  ;;  %v1452_v42 = vpop.eup %1451 }
 0x299   : >> { %1455 = vrcp.f32 %v964_v40  ;;  %v1454_v43 = vpop.eup %1453  ;;  %v977_v47 = vadd.f32 1.0, %v1452_v42 }
 0x29a   : >> { %1457 = vrcp.f32 %v970_v41 }
 0x29b   : >> { %1459 = vrcp.f32 %v977_v47 }
 0x2a3   : >> { %v1456_v45 = vpop.eup %1455 }
 0x2a4   : >> { %v1458_v48 = vpop.eup %1457  ;;  %v981_v0 = vmul.f32 %v1456_v45, %v1454_v43 }
 0x2a5   : >> { %v980_v53 = vmul.f32 %v1458_v48, %v741_v44  ;;  %v1460_v49 = vpop.eup %1459 }
 0x2a7   : >> { %v982_v54 = vadd.f32 %v981_v0, %v980_v53 }
 0x2a9   : >> { %1461 = vtanh.f32 %v982_v54  ;;  %v988_v55 = vsel %vm987_vm0, %v982_v54, %v741_v44 }
 0x2aa   : >> { %990 = vst [vmem:[#allocation3] sm:$0xff] %v988_v55 }
 0x2b1   : > { %730 = sbr.rel (!%p728_p4) target bundleno = 400 (0x190), region = 154 }
 0x2b3   : >> { %v1462_v50 = vpop.eup %1461 }
 0x2b4   : >> { %v984_v51 = vmul.f32 %v1462_v50, %v1460_v49 }
 0x2b6   : >> { %v989_v52 = vsel %vm987_vm0, %v984_v51, %v740_v21 }
 0x2b7   : >> { %991 = vst [vmem:[#allocation2] sm:$0xff] %v989_v52  ;;  %993 = vst [vmem:[%s992_s30] sm:$0xff] %v989_v52 }
 0x2b8   : > { %1000 = sbr.rel (!%p2150_p8) target bundleno = 708 (0x2c4), region = 63  ;;  %s1235_s7 = sshll.u32 (%p2150_p8), %s1603_s18, 3 }
 0x2b9   : > { %s1009_s23 = scalar_lea.vmem (%p2150_p8), %s2129_s4, %s1235_s7 }
 0x2be   : > { %v1051_v56 = vld [vmem:[%s2007_s26] sm:$0xff] (%p2150_p8)  ;;  %v1053_v57 = vld [vmem:[%s2007_s26 + $0x8] sm:$0xff] (%p2150_p8)  ;;  %v1055_v58 = vld [vmem:[%s2007_s26 + $0x10] sm:$0xff] (%p2150_p8) }
 0x2bf   : > { %v1057_v59 = vld [vmem:[%s2007_s26 + $0x18] sm:$0xff]  ;;  %v1059_v60 = vld [vmem:[%s2007_s26 + $0x20] sm:$0xff]  ;;  %v1061_v61 = vld [vmem:[%s2007_s26 + $0x28] sm:$0xff]  ;;  %1052 = vst [vmem:[%s1009_s23] sm:$0xff] %v1051_v56 }
 0x2c0   : > { %1054 = vst [vmem:[%s1009_s23 + $0x10] sm:$0xff] %v1053_v57  ;;  %1056 = vst [vmem:[%s1009_s23 + $0x20] sm:$0xff] %v1055_v58  ;;  %v1063_v62 = vld [vmem:[%s2007_s26 + $0x30] sm:$0xff]  ;;  %v1065_v63 = vld [vmem:[%s2007_s26 + $0x38] sm:$0xff] }
 0x2c1   : > { %1058 = vst [vmem:[%s1009_s23 + $0x30] sm:$0xff] %v1057_v59  ;;  %1060 = vst [vmem:[%s1009_s23 + $0x40] sm:$0xff] %v1059_v60 }
 0x2c2   : > { %1062 = vst [vmem:[%s1009_s23 + $0x50] sm:$0xff] %v1061_v61  ;;  %1064 = vst [vmem:[%s1009_s23 + $0x60] sm:$0xff] %v1063_v62 }
 0x2c3   : > { %1066 = vst [vmem:[%s1009_s23 + $0x70] sm:$0xff] %v1065_v63 }
 0x2c4 PF: > { %s20_s20 = sadd.s32 1, %s1611_s20   ;;  %s2151_s15 = smov %s1595_s16 }
 0x2c5   : > { %p17_p9 = scmp.ge.s32.totalorder %s20_s20, 4   ;;  %s2152_s16 = smov %s1599_s17 }
 0x2c6   : > { %s2153_s17 = smov %s1701_s27  ;;  %s2154_s18 = smov %s1607_s19 }
 0x2c7   : > { %s2155_s19 = smov %s2157_s22  ;;  %19 = sbr.rel (!%p17_p9) target bundleno = 9 (0x9), region = 165 }
 0x2ce   :  { %1082 = vsyncpa [#allocation6], 1 }
 0x2cf   :  { %1084 = vsyncpa [#allocation6 + $0x1], 1 }
 0x2d0   :  { %1085 = vsyncpa [#allocation8], 1 }
 0x2d1   :  { %1087 = vsyncpa [#allocation8 + $0x1], 1 }

// kernel: rnn_forward.3
= control target key start
LH: loop header
LB: loop body
LE: loop exit
PB: predicated region body
PF: predicated region fallthrough
CT: control target
= control target key end

     0   :  { %9 = vsyncpa [#allocation6], 0  ;;  %s2111_s0 = inlined_call_operand.vmem [shape: f32[64,256], index: 0, kind: input, shape index: {}]   ;;  %s2112_s1 = inlined_call_operand.vmem [shape: f32[2,256,512], index: 1, kind: input, shape index: {}]   ;;  %s2113_s2 = inlined_call_operand.hbm [shape: f32[2,128,512], index: 2, kind: input, shape index: {}]   ;;  %s2114_s3 = inlined_call_operand.vmem [shape: f32[2,1,512], index: 3, kind: input, shape index: {}]   ;;  %s2115_s4 = inlined_call_operand.vmem [shape: f32[64,256], index: 4, kind: output, shape index: {}]  }
   0x1   :  { %11 = vsyncpa [#allocation6 + $0x1], 0  ;;  %s1649_s15 = smov 0   ;;  %s1651_s16 = smov 0  }
   0x2   :  { %s1653_s17 = smov 0   ;;  %s1655_s18 = smov 0  }
   0x3   :  { %s1657_s19 = smov 0   ;;  %s1659_s20 = smov 0  }
   0x4 LB: > { %s1226_s21 = sadd.s32 4294967295, %s1613_s20   ;;  %s29_s22 = sadd.s32 1, %s1609_s19  ;;  %s1613_s20 = sphi %s1659_s20, %s17_s20   ;;  %s1609_s19 = sphi %s1657_s19, %s2125_s19   ;;  %s1605_s18 = sphi %s1655_s18, %s2124_s18   ;;  %s1601_s17 = sphi %s1653_s17, %s2123_s17   ;;  %s1597_s16 = sphi %s1651_s16, %s2122_s16   ;;  %s1593_s15 = sphi %s1649_s15, %s2121_s15  }
   0x5   : > { %p31_p0 = scmp.ge.s32.totalorder %s29_s22, 2  ;;  %s96_s23 = sadd.s32 1, %s1601_s17 }
   0x6   : > { %p103_p1 = scmp.ne.s32.totalorder %s1601_s17, %s1597_s16  ;;  %p104_p2 = scmp.eq.s32.totalorder %s1613_s20, 0 }
   0x7   : > { %s2127_s22 = smov (%p31_p0, %s29_s22), 0  ;;  %p109_p4 = scmp.ne.s32.totalorder %s1597_s16, %s1593_s15 }
   0x8   : > { %p1685_p3 = por %p104_p2, %p103_p1  ;;  %s93_s25 = ssub.s32 %s1609_s19, %s2127_s22 }
   0x9   : > { %p110_p5 = scmp.eq.s32.totalorder %s1226_s21, 0  ;;  %p94_p6 = scmp.eq.s32.totalorder %s93_s25, 0 }
   0xa   : > { %p169_p7 = scmp.eq.s32.totalorder %s1226_s21, 1  ;;  %p1452_p10 = scmp.lt.s32.totalorder %s1613_s20, 2 }
   0xb   : > { %p1692_p8 = por %p110_p5, %p109_p4  ;;  %s221_s29 = sand.u32 1, %s1601_s17  }
   0xc   : > { %s1697_s27 = scalar_select %p94_p6, %s1601_s17, %s96_s23  }
   0xd   : > { %p1699_p9 = por %p169_p7, %p103_p1  ;;  %s1251_s30 = sshll.u32 %s1609_s19, 13 }
   0xe   : > { %s1231_s5 = sshll.u32 %s221_s29, 9  ;;  %s1709_s8 = scalar_lea.hbm %s2113_s2, %s1251_s30 }
   0xf   : > { %s2118_s28 = scalar_select %p1699_p9, 1, 0 }
  0x10   : > { %s225_s9 = scalar_lea.vmem [#allocation5], %s1231_s5  ;;  %p1713_p11 = pnand %p1452_p10, %p1685_p3 }
  0x11   : > { %s232_s10 = sshll.u32 %s225_s9, 4  ;;  %s1719_s12 = scalar_lea.sflag [#allocation6], %s221_s29  ;;  %s1717_s10 = int_to_ptr.vmem [resolvable:$true] %s232_s10 }
  0x12   : > { %s1529_s13 = scalar_lea.hbm %s1709_s8, 8192  ;;  %p1531_p13 = pneg %p1713_p11 }
  0x13   : > { %p1530_p12 = scmp.ne.s32.totalorder %s1709_s8, %s1529_s13  ;;  %s1534_s21 = scalar_lea.hbm %s2113_s2, 16384 }
  0x14   : > { %p1535_p2 = scmp.lt.u32.totalorder %s1709_s8, %s2113_s2  ;;  %p1536_p3 = scmp.lt.u32.totalorder %s1534_s21, %s1529_s13 }
  0x15   : > { %p1532_p0 = pnand %p1531_p13, %p1530_p12  ;;  %p1538_p5 = scmp.lt.u32.totalorder %s1529_s13, %s1709_s8 }
  0x16   : > { %p1537_p4 = por %p1536_p3, %p1535_p2 }
  0x17   : > { %p1533_p1 = pneg %p1532_p0 }
  0x18   : > { %p1539_p6 = por %p1538_p5, %p1537_p4 }
  0x1a   : > { %p1540_p7 = pnand %p1539_p6, %p1533_p1 }
  0x1c   : > { %1543 = shalt.err (!%p1540_p7)
}
  0x1d   : > { %s1544_s25 = scalar_lea.vmem %s1717_s10, 8192  ;;  %s1619_s29 = smov [#allocation5]  }
  0x1e   : > { %p1545_p10 = scmp.ne.s32.totalorder %s1717_s10, %s1544_s25  ;;  %s1549_s30 = sshll.u32 %s1619_s29, 4  ;;  %s1550_s30 = int_to_ptr.vmem [resolvable:$false] %s1549_s30 }
  0x1f   : > { %s1551_s5 = scalar_lea.vmem %s1550_s30, 16384  ;;  %p1552_p9 = scmp.lt.s32.totalorder %s1717_s10, %s1550_s30 }
  0x20   : > { %p1547_p12 = pnand %p1545_p10, %p1531_p13  ;;  %p1553_p2 = scmp.lt.s32.totalorder %s1551_s5, %s1544_s25 }
  0x22   : > { %p1548_p0 = pneg %p1547_p12  ;;  %p1554_p3 = por %p1553_p2, %p1552_p9 }
  0x24   : > { %p1555_p4 = pnand %p1554_p3, %p1548_p0 }
  0x26   : > { %1558 = shalt.err (!%p1555_p4)
}
  0x27   : > { %s1620_s6 = smov 512   ;;  %s1621_s7 = smov 32  }
  0x28   : > { %1451 = dma.hbm_to_vmem [thread:$0]  (!%p1713_p11), %s1709_s8, 8192, %s1717_s10, %s1719_s12, %s1620_s6, %s1620_s6, %s1621_s7  }
  0x29   : > { %p1234_p13 = scmp.ge.s32.totalorder %s1613_s20, 1  ;;  %p247_p1 = scmp.lt.s32.totalorder %s1613_s20, 3 }
  0x2b   : > { %p248_p5 = pnand %p1234_p13, %p247_p1 }
  0x2c   : > { %s1750_s9 = sand.u32 (!%p248_p5), 1, %s1597_s16  }
  0x2d   : > { %251 = sbr.rel (%p248_p5) target bundleno = 680 (0x2a8), region = 36  ;;  %s1235_s13 = sshll.u32 (!%p248_p5), %s1750_s9, 9 }
  0x2e   : > { %s254_s14 = scalar_lea.sflag (!%p248_p5), [#allocation6], %s1750_s9  ;;  %s1754_s15 = scalar_lea.vmem (!%p248_p5), [#allocation5], %s1235_s13 }
  0x34   : > { %1588 = dma.done.wait (%p1692_p8), %s254_s14, 8192  }
  0x35   : > { %1590 = vsyncadd (%p1692_p8), %s254_s14, 4294959104  ;;  %s1236_s8 = sshll.u32 %s1750_s9, 6  ;;  %p315_p9 = scmp.lt.s32.totalorder %s1605_s18, 1  ;;  %v1622_v0 = vmov 0.0  }
  0x36   : > { %333 = vst [vmem:[#allocation2] sm:$0xff] %v1622_v0  ;;  %334 = vst [vmem:[#allocation3] sm:$0xff] %v1622_v0  ;;  %s1995_s13 = smov 0  }
  0x37   : > { %s1763_s10 = scalar_select %p315_p9, %s1605_s18, 1 }
  0x39   : > { %s1252_s11 = sshll.u32 %s1763_s10, 10  ;;  %s1239_s30 = sshll.u32 %s1763_s10, 2 }
  0x3a   : > { %s1769_s23 = scalar_lea.vmem %s2112_s1, %s1252_s11  ;;  %s323_s7 = scalar_lea.vmem %s2114_s3, %s1239_s30 }
  0x3b   : > { %v352_v1 = vld [vmem:[%s1769_s23 + $0x8] sm:$0xff]  ;;  %v354_v3 = vld [vmem:[%s1769_s23 + $0x18] sm:$0xff]  ;;  %v351_v6 = vld [vmem:[%s1769_s23] sm:$0xff]  ;;  %s1993_s10 = scalar_lea.vmem [#allocation7], %s1236_s8 }
  0x3c   : > { %v356_v2 = vld [vmem:[%s1769_s23 + $0x28] sm:$0xff]  ;;  %v358_v5 = vld [vmem:[%s1769_s23 + $0x38] sm:$0xff]  ;;  %v355_v7 = vld [vmem:[%s1769_s23 + $0x20] sm:$0xff] }
  0x3d   : > { %v1254_v4 = vpack.c.bf16 %v356_v2, %v352_v1  ;;  %v1318_v8 = vpack.c.bf16 %v358_v5, %v354_v3  ;;  %v1256_v9 = vpack.c.bf16 %v355_v7, %v351_v6  ;;  %v353_v10 = vld [vmem:[%s1769_s23 + $0x10] sm:$0xff]  ;;  %v360_v12 = vld [vmem:[%s1769_s23 + $0x48] sm:$0xff]  ;;  %v362_v15 = vld [vmem:[%s1769_s23 + $0x58] sm:$0xff] }
  0x3e   : > { %v357_v11 = vld [vmem:[%s1769_s23 + $0x30] sm:$0xff]  ;;  %v364_v14 = vld [vmem:[%s1769_s23 + $0x68] sm:$0xff]  ;;  %v366_v16 = vld [vmem:[%s1769_s23 + $0x78] sm:$0xff] }
  0x3f   : > { %1255 = vmatprep.subr.bf16.mxu0 %v1254_v4  ;;  %v1320_v13 = vpack.c.bf16 %v357_v11, %v353_v10  ;;  %1319 = vmatprep.subr.bf16.mxu1 %v1318_v8  ;;  %v1258_v17 = vpack.c.bf16 %v364_v14, %v360_v12  ;;  %v1322_v18 = vpack.c.bf16 %v366_v16, %v362_v15  ;;  %v359_v19 = vld [vmem:[%s1769_s23 + $0x40] sm:$0xff]  ;;  %v361_v21 = vld [vmem:[%s1769_s23 + $0x50] sm:$0xff]  ;;  %v368_v24 = vld [vmem:[%s1769_s23 + $0x88] sm:$0xff] }
  0x40   : > { %1257 = vmatpush1.bf16.msra.mxu0 %v1256_v9  ;;  %v363_v20 = vld [vmem:[%s1769_s23 + $0x60] sm:$0xff]  ;;  %v365_v23 = vld [vmem:[%s1769_s23 + $0x70] sm:$0xff]  ;;  %v372_v25 = vld [vmem:[%s1769_s23 + $0xa8] sm:$0xff] }
  0x41   : > { %1321 = vmatpush1.bf16.msra.mxu1 %v1320_v13  ;;  %v1260_v22 = vpack.c.bf16 %v363_v20, %v359_v19  ;;  %1259 = vmatprep.subr.bf16.mxu0 %v1258_v17  ;;  %v1324_v26 = vpack.c.bf16 %v365_v23, %v361_v21  ;;  %v1262_v27 = vpack.c.bf16 %v372_v25, %v368_v24  ;;  %v370_v28 = vld [vmem:[%s1769_s23 + $0x98] sm:$0xff]  ;;  %v367_v30 = vld [vmem:[%s1769_s23 + $0x80] sm:$0xff]  ;;  %v369_v33 = vld [vmem:[%s1769_s23 + $0x90] sm:$0xff] }
  0x42   : > { %1323 = vmatprep.subr.bf16.mxu1 %v1322_v18  ;;  %v374_v29 = vld [vmem:[%s1769_s23 + $0xb8] sm:$0xff]  ;;  %v371_v32 = vld [vmem:[%s1769_s23 + $0xa0] sm:$0xff]  ;;  %v373_v34 = vld [vmem:[%s1769_s23 + $0xb0] sm:$0xff] }
  0x43   : > { %v1326_v31 = vpack.c.bf16 %v374_v29, %v370_v28  ;;  %v1264_v35 = vpack.c.bf16 %v371_v32, %v367_v30  ;;  %v376_v36 = vld [vmem:[%s1769_s23 + $0xc8] sm:$0xff]  ;;  %v378_v38 = vld [vmem:[%s1769_s23 + $0xd8] sm:$0xff]  ;;  %v1328_v39 = vpack.c.bf16 %v373_v34, %v369_v33  ;;  %v375_v42 = vld [vmem:[%s1769_s23 + $0xc0] sm:$0xff] }
  0x44   : > { %1261 = vmatpush1.bf16.msra.mxu0 %v1260_v22  ;;  %v380_v37 = vld [vmem:[%s1769_s23 + $0xe8] sm:$0xff]  ;;  %v382_v41 = vld [vmem:[%s1769_s23 + $0xf8] sm:$0xff]  ;;  %v379_v43 = vld [vmem:[%s1769_s23 + $0xe0] sm:$0xff] }
  0x45   : > { %1325 = vmatpush1.bf16.msra.mxu1 %v1324_v26  ;;  %1263 = vmatprep.subr.bf16.mxu0 %v1262_v27  ;;  %v1266_v40 = vpack.c.bf16 %v380_v37, %v376_v36  ;;  %v1330_v44 = vpack.c.bf16 %v382_v41, %v378_v38  ;;  %v377_v45 = vld [vmem:[%s1769_s23 + $0xd0] sm:$0xff]  ;;  %v384_v47 = vld [vmem:[%s1769_s23 + $0x108] sm:$0xff]  ;;  %v386_v49 = vld [vmem:[%s1769_s23 + $0x118] sm:$0xff]  ;;  %v1268_v51 = vpack.c.bf16 %v379_v43, %v375_v42 }
  0x46   : > { %1327 = vmatprep.subr.bf16.mxu1 %v1326_v31  ;;  %v381_v46 = vld [vmem:[%s1769_s23 + $0xf0] sm:$0xff]  ;;  %v388_v48 = vld [vmem:[%s1769_s23 + $0x128] sm:$0xff]  ;;  %v390_v50 = vld [vmem:[%s1769_s23 + $0x138] sm:$0xff] }
  0x47   : > { %v1332_v52 = vpack.c.bf16 %v381_v46, %v377_v45  ;;  %v1270_v53 = vpack.c.bf16 %v388_v48, %v384_v47  ;;  %v383_v54 = vld [vmem:[%s1769_s23 + $0x100] sm:$0xff]  ;;  %v385_v56 = vld [vmem:[%s1769_s23 + $0x110] sm:$0xff]  ;;  %v1334_v57 = vpack.c.bf16 %v390_v50, %v386_v49  ;;  %v392_v59 = vld [vmem:[%s1769_s23 + $0x148] sm:$0xff] }
  0x48   : > { %1265 = vmatpush1.bf16.msra.mxu0 %v1264_v35  ;;  %v387_v55 = vld [vmem:[%s1769_s23 + $0x120] sm:$0xff]  ;;  %v389_v58 = vld [vmem:[%s1769_s23 + $0x130] sm:$0xff]  ;;  %v396_v60 = vld [vmem:[%s1769_s23 + $0x168] sm:$0xff] }
  0x49   : > { %1329 = vmatpush1.bf16.msra.mxu1 %v1328_v39  ;;  %1267 = vmatprep.subr.bf16.mxu0 %v1266_v40  ;;  %v394_v61 = vld [vmem:[%s1769_s23 + $0x158] sm:$0xff]  ;;  %v1272_v63 = vpack.c.bf16 %v387_v55, %v383_v54  ;;  %v1336_v0 = vpack.c.bf16 %v389_v58, %v385_v56  ;;  %v1274_v1 = vpack.c.bf16 %v396_v60, %v392_v59  ;;  %v391_v2 = vld [vmem:[%s1769_s23 + $0x140] sm:$0xff]  ;;  %v393_v4 = vld [vmem:[%s1769_s23 + $0x150] sm:$0xff] }
  0x4a   : > { %1331 = vmatprep.subr.bf16.mxu1 %v1330_v44  ;;  %v398_v62 = vld [vmem:[%s1769_s23 + $0x178] sm:$0xff]  ;;  %v395_v3 = vld [vmem:[%s1769_s23 + $0x160] sm:$0xff]  ;;  %v397_v6 = vld [vmem:[%s1769_s23 + $0x170] sm:$0xff] }
  0x4b   : > { %v1338_v5 = vpack.c.bf16 %v398_v62, %v394_v61  ;;  %v400_v7 = vld [vmem:[%s1769_s23 + $0x188] sm:$0xff]  ;;  %v402_v9 = vld [vmem:[%s1769_s23 + $0x198] sm:$0xff]  ;;  %v1276_v11 = vpack.c.bf16 %v395_v3, %v391_v2  ;;  %v1340_v12 = vpack.c.bf16 %v397_v6, %v393_v4  ;;  %v399_v14 = vld [vmem:[%s1769_s23 + $0x180] sm:$0xff] }
  0x4c   : > { %1269 = vmatpush1.bf16.msra.mxu0 %v1268_v51  ;;  %v404_v8 = vld [vmem:[%s1769_s23 + $0x1a8] sm:$0xff]  ;;  %v406_v10 = vld [vmem:[%s1769_s23 + $0x1b8] sm:$0xff]  ;;  %v403_v15 = vld [vmem:[%s1769_s23 + $0x1a0] sm:$0xff] }
  0x4d   : > { %1333 = vmatpush1.bf16.msra.mxu1 %v1332_v52  ;;  %1271 = vmatprep.subr.bf16.mxu0 %v1270_v53  ;;  %v1278_v13 = vpack.c.bf16 %v404_v8, %v400_v7  ;;  %v401_v16 = vld [vmem:[%s1769_s23 + $0x190] sm:$0xff]  ;;  %v1342_v17 = vpack.c.bf16 %v406_v10, %v402_v9  ;;  %v408_v19 = vld [vmem:[%s1769_s23 + $0x1c8] sm:$0xff]  ;;  %v410_v21 = vld [vmem:[%s1769_s23 + $0x1d8] sm:$0xff]  ;;  %v1280_v23 = vpack.c.bf16 %v403_v15, %v399_v14 }
  0x4e   : > { %1335 = vmatprep.subr.bf16.mxu1 %v1334_v57  ;;  %v405_v18 = vld [vmem:[%s1769_s23 + $0x1b0] sm:$0xff]  ;;  %v412_v20 = vld [vmem:[%s1769_s23 + $0x1e8] sm:$0xff]  ;;  %v414_v22 = vld [vmem:[%s1769_s23 + $0x1f8] sm:$0xff] }
  0x4f   : > { %v1344_v24 = vpack.c.bf16 %v405_v18, %v401_v16  ;;  %v1282_v25 = vpack.c.bf16 %v412_v20, %v408_v19  ;;  %v407_v26 = vld [vmem:[%s1769_s23 + $0x1c0] sm:$0xff]  ;;  %v409_v28 = vld [vmem:[%s1769_s23 + $0x1d0] sm:$0xff]  ;;  %v1346_v29 = vpack.c.bf16 %v414_v22, %v410_v21  ;;  %v416_v31 = vld [vmem:[%s1769_s23 + $0x208] sm:$0xff] }
  0x50   : > { %1273 = vmatpush1.bf16.msra.mxu0 %v1272_v63  ;;  %v411_v27 = vld [vmem:[%s1769_s23 + $0x1e0] sm:$0xff]  ;;  %v413_v30 = vld [vmem:[%s1769_s23 + $0x1f0] sm:$0xff]  ;;  %v420_v32 = vld [vmem:[%s1769_s23 + $0x228] sm:$0xff] }
  0x51   : > { %1337 = vmatpush1.bf16.msra.mxu1 %v1336_v0  ;;  %1275 = vmatprep.subr.bf16.mxu0 %v1274_v1  ;;  %v418_v33 = vld [vmem:[%s1769_s23 + $0x218] sm:$0xff]  ;;  %v1284_v35 = vpack.c.bf16 %v411_v27, %v407_v26  ;;  %v1348_v36 = vpack.c.bf16 %v413_v30, %v409_v28  ;;  %v1286_v37 = vpack.c.bf16 %v420_v32, %v416_v31  ;;  %v415_v38 = vld [vmem:[%s1769_s23 + $0x200] sm:$0xff]  ;;  %v417_v40 = vld [vmem:[%s1769_s23 + $0x210] sm:$0xff] }
  0x52   : > { %1339 = vmatprep.subr.bf16.mxu1 %v1338_v5  ;;  %v422_v34 = vld [vmem:[%s1769_s23 + $0x238] sm:$0xff]  ;;  %v419_v39 = vld [vmem:[%s1769_s23 + $0x220] sm:$0xff]  ;;  %v421_v42 = vld [vmem:[%s1769_s23 + $0x230] sm:$0xff] }
  0x53   : > { %v1350_v41 = vpack.c.bf16 %v422_v34, %v418_v33  ;;  %v424_v43 = vld [vmem:[%s1769_s23 + $0x248] sm:$0xff]  ;;  %v426_v45 = vld [vmem:[%s1769_s23 + $0x258] sm:$0xff]  ;;  %v1288_v47 = vpack.c.bf16 %v419_v39, %v415_v38  ;;  %v1352_v48 = vpack.c.bf16 %v421_v42, %v417_v40  ;;  %v423_v50 = vld [vmem:[%s1769_s23 + $0x240] sm:$0xff] }
  0x54   : > { %1277 = vmatpush1.bf16.msra.mxu0 %v1276_v11  ;;  %v428_v44 = vld [vmem:[%s1769_s23 + $0x268] sm:$0xff]  ;;  %v430_v46 = vld [vmem:[%s1769_s23 + $0x278] sm:$0xff]  ;;  %v427_v51 = vld [vmem:[%s1769_s23 + $0x260] sm:$0xff] }
  0x55   : > { %1341 = vmatpush1.bf16.msra.mxu1 %v1340_v12  ;;  %1279 = vmatprep.subr.bf16.mxu0 %v1278_v13  ;;  %v1290_v49 = vpack.c.bf16 %v428_v44, %v424_v43  ;;  %v425_v52 = vld [vmem:[%s1769_s23 + $0x250] sm:$0xff]  ;;  %v1354_v53 = vpack.c.bf16 %v430_v46, %v426_v45  ;;  %v432_v55 = vld [vmem:[%s1769_s23 + $0x288] sm:$0xff]  ;;  %v434_v57 = vld [vmem:[%s1769_s23 + $0x298] sm:$0xff]  ;;  %v1292_v59 = vpack.c.bf16 %v427_v51, %v423_v50 }
  0x56   : > { %1343 = vmatprep.subr.bf16.mxu1 %v1342_v17  ;;  %v429_v54 = vld [vmem:[%s1769_s23 + $0x270] sm:$0xff]  ;;  %v436_v56 = vld [vmem:[%s1769_s23 + $0x2a8] sm:$0xff]  ;;  %v438_v58 = vld [vmem:[%s1769_s23 + $0x2b8] sm:$0xff] }
  0x57   : > { %v1356_v60 = vpack.c.bf16 %v429_v54, %v425_v52  ;;  %v1294_v61 = vpack.c.bf16 %v436_v56, %v432_v55  ;;  %v431_v62 = vld [vmem:[%s1769_s23 + $0x280] sm:$0xff]  ;;  %v433_v0 = vld [vmem:[%s1769_s23 + $0x290] sm:$0xff]  ;;  %v1358_v1 = vpack.c.bf16 %v438_v58, %v434_v57  ;;  %v440_v3 = vld [vmem:[%s1769_s23 + $0x2c8] sm:$0xff] }
  0x58   : > { %1281 = vmatpush1.bf16.msra.mxu0 %v1280_v23  ;;  %v435_v63 = vld [vmem:[%s1769_s23 + $0x2a0] sm:$0xff]  ;;  %v437_v2 = vld [vmem:[%s1769_s23 + $0x2b0] sm:$0xff]  ;;  %v444_v4 = vld [vmem:[%s1769_s23 + $0x2e8] sm:$0xff] }
  0x59   : > { %1345 = vmatpush1.bf16.msra.mxu1 %v1344_v24  ;;  %1283 = vmatprep.subr.bf16.mxu0 %v1282_v25  ;;  %v442_v5 = vld [vmem:[%s1769_s23 + $0x2d8] sm:$0xff]  ;;  %v1296_v7 = vpack.c.bf16 %v435_v63, %v431_v62  ;;  %v439_v8 = vld [vmem:[%s1769_s23 + $0x2c0] sm:$0xff]  ;;  %v1360_v9 = vpack.c.bf16 %v437_v2, %v433_v0  ;;  %v1298_v10 = vpack.c.bf16 %v444_v4, %v440_v3  ;;  %v441_v12 = vld [vmem:[%s1769_s23 + $0x2d0] sm:$0xff] }
  0x5a   : > { %1347 = vmatprep.subr.bf16.mxu1 %v1346_v29  ;;  %v446_v6 = vld [vmem:[%s1769_s23 + $0x2f8] sm:$0xff]  ;;  %v443_v11 = vld [vmem:[%s1769_s23 + $0x2e0] sm:$0xff]  ;;  %v445_v13 = vld [vmem:[%s1769_s23 + $0x2f0] sm:$0xff] }
  0x5b   : > { %v1362_v14 = vpack.c.bf16 %v446_v6, %v442_v5  ;;  %v448_v15 = vld [vmem:[%s1769_s23 + $0x308] sm:$0xff]  ;;  %v450_v18 = vld [vmem:[%s1769_s23 + $0x318] sm:$0xff]  ;;  %v1300_v20 = vpack.c.bf16 %v443_v11, %v439_v8  ;;  %v1364_v21 = vpack.c.bf16 %v445_v13, %v441_v12  ;;  %v447_v23 = vld [vmem:[%s1769_s23 + $0x300] sm:$0xff] }
  0x5c   : > { %1285 = vmatpush1.bf16.msra.mxu0 %v1284_v35  ;;  %v452_v16 = vld [vmem:[%s1769_s23 + $0x328] sm:$0xff]  ;;  %v454_v19 = vld [vmem:[%s1769_s23 + $0x338] sm:$0xff]  ;;  %v451_v24 = vld [vmem:[%s1769_s23 + $0x320] sm:$0xff] }
  0x5d   : > { %1349 = vmatpush1.bf16.msra.mxu1 %v1348_v36  ;;  %1287 = vmatprep.subr.bf16.mxu0 %v1286_v37  ;;  %v336_v17 = vld [vmem:[%s2111_s0 + $0x8] sm:$0xff]  ;;  %v1302_v22 = vpack.c.bf16 %v452_v16, %v448_v15  ;;  %v449_v25 = vld [vmem:[%s1769_s23 + $0x310] sm:$0xff]  ;;  %v1366_v26 = vpack.c.bf16 %v454_v19, %v450_v18  ;;  %v458_v30 = vld [vmem:[%s1769_s23 + $0x358] sm:$0xff]  ;;  %v1304_v32 = vpack.c.bf16 %v451_v24, %v447_v23 }
  0x5e   : > { %1351 = vmatprep.subr.bf16.mxu1 %v1350_v41  ;;  %565 = vmatprep.mubr.f32.mxu0 %v336_v17  ;;  %v453_v27 = vld [vmem:[%s1769_s23 + $0x330] sm:$0xff]  ;;  %v456_v28 = vld [vmem:[%s1769_s23 + $0x348] sm:$0xff]  ;;  %v462_v31 = vld [vmem:[%s1769_s23 + $0x378] sm:$0xff] }
  0x5f   : > { %678 = vmatprep.mubr.f32.mxu1 %v336_v17  ;;  %v460_v29 = vld [vmem:[%s1769_s23 + $0x368] sm:$0xff]  ;;  %v1368_v33 = vpack.c.bf16 %v453_v27, %v449_v25  ;;  %v455_v35 = vld [vmem:[%s1769_s23 + $0x340] sm:$0xff]  ;;  %v457_v37 = vld [vmem:[%s1769_s23 + $0x350] sm:$0xff]  ;;  %v1370_v38 = vpack.c.bf16 %v462_v31, %v458_v30  ;;  %v481_v17 = vlaneseq }
  0x60   : > { %1289 = vmatpush1.bf16.msra.mxu0 %v1288_v47  ;;  %v1306_v34 = vpack.c.bf16 %v460_v29, %v456_v28  ;;  %v459_v36 = vld [vmem:[%s1769_s23 + $0x360] sm:$0xff]  ;;  %v461_v39 = vld [vmem:[%s1769_s23 + $0x370] sm:$0xff]  ;;  %v464_v40 = vld [vmem:[%s1769_s23 + $0x388] sm:$0xff] }
  0x61   : > { %1353 = vmatpush1.bf16.msra.mxu1 %v1352_v48  ;;  %1291 = vmatprep.subr.bf16.mxu0 %v1290_v49  ;;  %v468_v41 = vld [vmem:[%s1769_s23 + $0x3a8] sm:$0xff]  ;;  %v466_v42 = vld [vmem:[%s1769_s23 + $0x398] sm:$0xff]  ;;  %v1308_v44 = vpack.c.bf16 %v459_v36, %v455_v35  ;;  %v1372_v45 = vpack.c.bf16 %v461_v39, %v457_v37  ;;  %v463_v47 = vld [vmem:[%s1769_s23 + $0x380] sm:$0xff]  ;;  %v482_v18 = vshrl.u32 %v481_v17, 7 }
  0x62   : > { %1355 = vmatprep.subr.bf16.mxu1 %v1354_v53  ;;  %v470_v43 = vld [vmem:[%s1769_s23 + $0x3b8] sm:$0xff]  ;;  %v1310_v46 = vpack.c.bf16 %v468_v41, %v464_v40  ;;  %v467_v48 = vld [vmem:[%s1769_s23 + $0x3a0] sm:$0xff]  ;;  %v465_v49 = vld [vmem:[%s1769_s23 + $0x390] sm:$0xff] }
  0x63   : > { %v1374_v50 = vpack.c.bf16 %v470_v43, %v466_v42  ;;  %v469_v51 = vld [vmem:[%s1769_s23 + $0x3b0] sm:$0xff]  ;;  %v472_v52 = vld [vmem:[%s1769_s23 + $0x3c8] sm:$0xff]  ;;  %v474_v54 = vld [vmem:[%s1769_s23 + $0x3d8] sm:$0xff]  ;;  %v1312_v56 = vpack.c.bf16 %v467_v48, %v463_v47  ;;  %v483_v19 = vsub.s32 0, %v482_v18  ;;  %v495_v23 = vsub.s32 3, %v482_v18 }
  0x64   : > { %1293 = vmatpush1.bf16.msra.mxu0 %v1292_v59  ;;  %v476_v53 = vld [vmem:[%s1769_s23 + $0x3e8] sm:$0xff]  ;;  %v478_v55 = vld [vmem:[%s1769_s23 + $0x3f8] sm:$0xff]  ;;  %v1376_v57 = vpack.c.bf16 %v469_v51, %v465_v49  ;;  %v471_v59 = vld [vmem:[%s1769_s23 + $0x3c0] sm:$0xff] }
  0x65   : > { %1357 = vmatpush1.bf16.msra.mxu1 %v1356_v60  ;;  %1295 = vmatprep.subr.bf16.mxu0 %v1294_v61  ;;  %v1314_v58 = vpack.c.bf16 %v476_v53, %v472_v52  ;;  %v475_v60 = vld [vmem:[%s1769_s23 + $0x3e0] sm:$0xff]  ;;  %v1378_v61 = vpack.c.bf16 %v478_v55, %v474_v54  ;;  %v473_v62 = vld [vmem:[%s1769_s23 + $0x3d0] sm:$0xff]  ;;  %v338_v3 = vld [vmem:[%s2111_s0 + $0x18] sm:$0xff] }
  0x66   : > { %1359 = vmatprep.subr.bf16.mxu1 %v1358_v1  ;;  %v477_v63 = vld [vmem:[%s1769_s23 + $0x3f0] sm:$0xff]  ;;  %v1316_v0 = vpack.c.bf16 %v475_v60, %v471_v59  ;;  %v335_v2 = vld [vmem:[%s2111_s0] sm:$0xff]  ;;  %v340_v5 = vld [vmem:[%s2111_s0 + $0x28] sm:$0xff] }
  0x67   : > { %v1380_v1 = vpack.c.bf16 %v477_v63, %v473_v62  ;;  %v337_v4 = vld [vmem:[%s2111_s0 + $0x10] sm:$0xff]  ;;  %v339_v6 = vld [vmem:[%s2111_s0 + $0x20] sm:$0xff]  ;;  %v346_v11 = vld [vmem:[%s2111_s0 + $0x58] sm:$0xff] }
  0x68   : > { %1297 = vmatpush1.bf16.msra.mxu0 %v1296_v7  ;;  %v342_v7 = vld [vmem:[%s2111_s0 + $0x38] sm:$0xff]  ;;  %v341_v8 = vld [vmem:[%s2111_s0 + $0x30] sm:$0xff]  ;;  %v348_v13 = vld [vmem:[%s2111_s0 + $0x68] sm:$0xff] }
  0x69   : > { %1361 = vmatpush1.bf16.msra.mxu1 %v1360_v9  ;;  %1299 = vmatprep.subr.bf16.mxu0 %v1298_v10  ;;  %v344_v9 = vld [vmem:[%s2111_s0 + $0x48] sm:$0xff]  ;;  %v343_v10 = vld [vmem:[%s2111_s0 + $0x40] sm:$0xff]  ;;  %v345_v12 = vld [vmem:[%s2111_s0 + $0x50] sm:$0xff] }
  0x6a   : > { %1363 = vmatprep.subr.bf16.mxu1 %v1362_v14  ;;  %v347_v14 = vld [vmem:[%s2111_s0 + $0x60] sm:$0xff]  ;;  %v350_v15 = vld [vmem:[%s2111_s0 + $0x78] sm:$0xff]  ;;  %v349_v16 = vld [vmem:[%s2111_s0 + $0x70] sm:$0xff] }
  0x6c   : > { %1301 = vmatpush1.bf16.msra.mxu0 %v1300_v20  ;;  %v479_v20 = vld [vmem:[%s323_s7] sm:$0xf] }
  0x6d   : > { %1365 = vmatpush1.bf16.msra.mxu1 %v1364_v21  ;;  %1303 = vmatprep.subr.bf16.mxu0 %v1302_v22  ;;  %v491_v21 = vsub.s32 2, %v482_v18  ;;  %v487_v22 = vsub.s32 1, %v482_v18  ;;  %v1951_v24 = vrot.slane %v479_v20, %v483_v19  ;;  %v1957_v27 = vrot.slane %v479_v20, %v495_v23 }
  0x6e   : > { %1367 = vmatprep.subr.bf16.mxu1 %v1366_v26 }
  0x6f   : > { %v1953_v25 = vrot.slane %v479_v20, %v491_v21  ;;  %v1955_v26 = vrot.slane %v479_v20, %v487_v22 }
  0x70   : > { %1305 = vmatpush1.bf16.msra.mxu0 %v1304_v32 }
  0x71   : > { %1369 = vmatpush1.bf16.msra.mxu1 %v1368_v33  ;;  %1307 = vmatprep.subr.bf16.mxu0 %v1306_v34 }
  0x72   : > { %1371 = vmatprep.subr.bf16.mxu1 %v1370_v38 }
  0x74   : > { %1309 = vmatpush1.bf16.msra.mxu0 %v1308_v44 }
  0x75   : > { %1373 = vmatpush1.bf16.msra.mxu1 %v1372_v45  ;;  %1311 = vmatprep.subr.bf16.mxu0 %v1310_v46 }
  0x76   : > { %1375 = vmatprep.subr.bf16.mxu1 %v1374_v50 }
  0x78   : > { %1313 = vmatpush1.bf16.msra.mxu0 %v1312_v56 }
  0x79   : > { %1377 = vmatpush1.bf16.msra.mxu1 %v1376_v57  ;;  %1315 = vmatprep.subr.bf16.mxu0 %v1314_v58 }
  0x7a   : > { %1379 = vmatprep.subr.bf16.mxu1 %v1378_v61 }
  0x7c   : > { %1317 = vmatpush1.bf16.msra.mxu0 %v1316_v0 }
  0x7d   : > { %1381 = vmatpush1.bf16.msra.mxu1 %v1380_v1 }
  0x7f   : > { %566 = vmatmul.mubr.f32.vlgmr.msra.gmra.mrb[0].mxu0 %v335_v2 }
  0x80   : > { %679 = vmatmul.mubr.f32.vlgmr.msra.gmra.mrb[0].mxu1 %v335_v2  ;;  %571 = vmatprep.mubr.f32.mxu0 %v338_v3 }
  0x81   : > { %684 = vmatprep.mubr.f32.mxu1 %v338_v3 }
  0x83   : > { %572 = vmatmul.mubr.f32.gmra.mrb[2].mxu0 %v337_v4 }
  0x84   : > { %685 = vmatmul.mubr.f32.gmra.mrb[2].mxu1 %v337_v4  ;;  %577 = vmatprep.mubr.f32.mxu0 %v340_v5 }
  0x85   : > { %690 = vmatprep.mubr.f32.mxu1 %v340_v5 }
  0x87   : > { %578 = vmatmul.mubr.f32.gmra.mrb[4].mxu0 %v339_v6 }
  0x88   : > { %691 = vmatmul.mubr.f32.gmra.mrb[4].mxu1 %v339_v6  ;;  %583 = vmatprep.mubr.f32.mxu0 %v342_v7 }
  0x89   : > { %696 = vmatprep.mubr.f32.mxu1 %v342_v7 }
  0x8b   : > { %584 = vmatmul.mubr.f32.gmra.mrb[6].mxu0 %v341_v8 }
  0x8c   : > { %697 = vmatmul.mubr.f32.gmra.mrb[6].mxu1 %v341_v8  ;;  %589 = vmatprep.mubr.f32.mxu0 %v344_v9 }
  0x8d   : > { %702 = vmatprep.mubr.f32.mxu1 %v344_v9 }
  0x8f   : > { %590 = vmatmul.mubr.f32.gmra.mrb[8].mxu0 %v343_v10 }
  0x90   : > { %703 = vmatmul.mubr.f32.gmra.mrb[8].mxu1 %v343_v10  ;;  %595 = vmatprep.mubr.f32.mxu0 %v346_v11 }
  0x91   : > { %708 = vmatprep.mubr.f32.mxu1 %v346_v11 }
  0x93   : > { %596 = vmatmul.mubr.f32.gmra.mrb[10].mxu0 %v345_v12 }
  0x94   : > { %709 = vmatmul.mubr.f32.gmra.mrb[10].mxu1 %v345_v12  ;;  %601 = vmatprep.mubr.f32.mxu0 %v348_v13 }
  0x95   : > { %714 = vmatprep.mubr.f32.mxu1 %v348_v13 }
  0x97   : > { %602 = vmatmul.mubr.f32.gmra.mrb[12].mxu0 %v347_v14 }
  0x98   : > { %715 = vmatmul.mubr.f32.gmra.mrb[12].mxu1 %v347_v14  ;;  %607 = vmatprep.mubr.f32.mxu0 %v350_v15 }
  0x99   : > { %720 = vmatprep.mubr.f32.mxu1 %v350_v15 }
  0x9b   : > { %608 = vmatmul.mubr.f32.gmra.mrb[14].mxu0 %v349_v16 }
  0x9c   : > { %721 = vmatmul.mubr.f32.gmra.mrb[14].mxu1 %v349_v16 }
 0x152   : > { %v567_v28 = vpop.f32.mrb[0].mxu0 }
 0x153   : > { %v568_v29 = vadd.f32 %v567_v28, %v1951_v24  ;;  %v680_v30 = vpop.f32.mrb[0].mxu1  ;;  %v569_v31 = vpop.f32.mrb[1].mxu0 }
 0x154   : > { %v681_v32 = vadd.f32 %v680_v30, %v1953_v25  ;;  %v570_v33 = vadd.f32 %v569_v31, %v1955_v26  ;;  %v682_v34 = vpop.f32.mrb[1].mxu1 }
 0x155   : > { %727 = vst [vmem:[#allocation4] sm:$0xff] %v568_v29  ;;  %v683_v35 = vadd.f32 %v682_v34, %v1957_v27 }
 0x156   : > { %729 = vst [vmem:[#allocation4 + $0x10] sm:$0xff] %v681_v32  ;;  %728 = vst [vmem:[#allocation4 + $0x8] sm:$0xff] %v570_v33  ;;  %v573_v36 = vpop.f32.mrb[2].mxu0 }
 0x157   : > { %730 = vst [vmem:[#allocation4 + $0x18] sm:$0xff] %v683_v35  ;;  %v574_v37 = vadd.f32 %v573_v36, %v1951_v24  ;;  %v686_v38 = vpop.f32.mrb[2].mxu1  ;;  %v575_v39 = vpop.f32.mrb[3].mxu0 }
 0x158   : > { %v687_v40 = vadd.f32 %v686_v38, %v1953_v25  ;;  %v576_v41 = vadd.f32 %v575_v39, %v1955_v26  ;;  %v688_v42 = vpop.f32.mrb[3].mxu1 }
 0x159   : > { %731 = vst [vmem:[#allocation4 + $0x20] sm:$0xff] %v574_v37  ;;  %v689_v43 = vadd.f32 %v688_v42, %v1957_v27 }
 0x15a   : > { %733 = vst [vmem:[#allocation4 + $0x30] sm:$0xff] %v687_v40  ;;  %732 = vst [vmem:[#allocation4 + $0x28] sm:$0xff] %v576_v41  ;;  %v579_v44 = vpop.f32.mrb[4].mxu0 }
 0x15b   : > { %734 = vst [vmem:[#allocation4 + $0x38] sm:$0xff] %v689_v43  ;;  %v580_v45 = vadd.f32 %v579_v44, %v1951_v24  ;;  %v692_v46 = vpop.f32.mrb[4].mxu1  ;;  %v581_v47 = vpop.f32.mrb[5].mxu0 }
 0x15c   : > { %v693_v48 = vadd.f32 %v692_v46, %v1953_v25  ;;  %v582_v49 = vadd.f32 %v581_v47, %v1955_v26  ;;  %v694_v50 = vpop.f32.mrb[5].mxu1 }
 0x15d   : > { %735 = vst [vmem:[#allocation4 + $0x40] sm:$0xff] %v580_v45  ;;  %v695_v51 = vadd.f32 %v694_v50, %v1957_v27 }
 0x15e   : > { %737 = vst [vmem:[#allocation4 + $0x50] sm:$0xff] %v693_v48  ;;  %736 = vst [vmem:[#allocation4 + $0x48] sm:$0xff] %v582_v49  ;;  %v585_v52 = vpop.f32.mrb[6].mxu0 }
 0x15f   : > { %738 = vst [vmem:[#allocation4 + $0x58] sm:$0xff] %v695_v51  ;;  %v586_v53 = vadd.f32 %v585_v52, %v1951_v24  ;;  %v698_v54 = vpop.f32.mrb[6].mxu1  ;;  %v587_v55 = vpop.f32.mrb[7].mxu0 }
 0x160   : > { %v699_v56 = vadd.f32 %v698_v54, %v1953_v25  ;;  %v588_v57 = vadd.f32 %v587_v55, %v1955_v26  ;;  %v700_v58 = vpop.f32.mrb[7].mxu1 }
 0x161   : > { %739 = vst [vmem:[#allocation4 + $0x60] sm:$0xff] %v586_v53  ;;  %v701_v59 = vadd.f32 %v700_v58, %v1957_v27 }
 0x162   : > { %741 = vst [vmem:[#allocation4 + $0x70] sm:$0xff] %v699_v56  ;;  %740 = vst [vmem:[#allocation4 + $0x68] sm:$0xff] %v588_v57  ;;  %v591_v60 = vpop.f32.mrb[8].mxu0 }
 0x163   : > { %742 = vst [vmem:[#allocation4 + $0x78] sm:$0xff] %v701_v59  ;;  %v592_v61 = vadd.f32 %v591_v60, %v1951_v24  ;;  %v704_v62 = vpop.f32.mrb[8].mxu1  ;;  %v593_v63 = vpop.f32.mrb[9].mxu0 }
 0x164   : > { %v705_v0 = vadd.f32 %v704_v62, %v1953_v25  ;;  %v594_v1 = vadd.f32 %v593_v63, %v1955_v26  ;;  %v706_v2 = vpop.f32.mrb[9].mxu1 }
 0x165   : > { %743 = vst [vmem:[#allocation4 + $0x80] sm:$0xff] %v592_v61  ;;  %v707_v3 = vadd.f32 %v706_v2, %v1957_v27 }
 0x166   : > { %745 = vst [vmem:[#allocation4 + $0x90] sm:$0xff] %v705_v0  ;;  %744 = vst [vmem:[#allocation4 + $0x88] sm:$0xff] %v594_v1  ;;  %v597_v4 = vpop.f32.mrb[10].mxu0 }
 0x167   : > { %746 = vst [vmem:[#allocation4 + $0x98] sm:$0xff] %v707_v3  ;;  %v598_v5 = vadd.f32 %v597_v4, %v1951_v24  ;;  %v710_v6 = vpop.f32.mrb[10].mxu1  ;;  %v599_v7 = vpop.f32.mrb[11].mxu0 }
 0x168   : > { %v711_v8 = vadd.f32 %v710_v6, %v1953_v25  ;;  %v600_v9 = vadd.f32 %v599_v7, %v1955_v26  ;;  %v712_v10 = vpop.f32.mrb[11].mxu1 }
 0x169   : > { %747 = vst [vmem:[#allocation4 + $0xa0] sm:$0xff] %v598_v5  ;;  %v713_v11 = vadd.f32 %v712_v10, %v1957_v27 }
 0x16a   : > { %749 = vst [vmem:[#allocation4 + $0xb0] sm:$0xff] %v711_v8  ;;  %748 = vst [vmem:[#allocation4 + $0xa8] sm:$0xff] %v600_v9  ;;  %v603_v12 = vpop.f32.mrb[12].mxu0 }
 0x16b   : > { %750 = vst [vmem:[#allocation4 + $0xb8] sm:$0xff] %v713_v11  ;;  %v604_v13 = vadd.f32 %v603_v12, %v1951_v24  ;;  %v716_v14 = vpop.f32.mrb[12].mxu1  ;;  %v605_v15 = vpop.f32.mrb[13].mxu0 }
 0x16c   : > { %v717_v16 = vadd.f32 %v716_v14, %v1953_v25  ;;  %v606_v17 = vadd.f32 %v605_v15, %v1955_v26  ;;  %v718_v18 = vpop.f32.mrb[13].mxu1 }
 0x16d   : > { %751 = vst [vmem:[#allocation4 + $0xc0] sm:$0xff] %v604_v13  ;;  %v719_v19 = vadd.f32 %v718_v18, %v1957_v27 }
 0x16e   : > { %753 = vst [vmem:[#allocation4 + $0xd0] sm:$0xff] %v717_v16  ;;  %752 = vst [vmem:[#allocation4 + $0xc8] sm:$0xff] %v606_v17  ;;  %v609_v20 = vpop.f32.mrb[14].mxu0 }
 0x16f   : > { %754 = vst [vmem:[#allocation4 + $0xd8] sm:$0xff] %v719_v19  ;;  %v610_v21 = vadd.f32 %v609_v20, %v1951_v24  ;;  %v722_v22 = vpop.f32.mrb[14].mxu1  ;;  %v611_v23 = vpop.f32.mrb[15].mxu0 }
 0x170   : > { %v723_v28 = vadd.f32 %v722_v22, %v1953_v25  ;;  %v612_v29 = vadd.f32 %v611_v23, %v1955_v26  ;;  %v724_v30 = vpop.f32.mrb[15].mxu1 }
 0x171   : > { %755 = vst [vmem:[#allocation4 + $0xe0] sm:$0xff] %v610_v21  ;;  %v725_v31 = vadd.f32 %v724_v30, %v1957_v27 }
 0x172   : > { %757 = vst [vmem:[#allocation4 + $0xf0] sm:$0xff] %v723_v28  ;;  %756 = vst [vmem:[#allocation4 + $0xe8] sm:$0xff] %v612_v29 }
 0x173   : > { %758 = vst [vmem:[#allocation4 + $0xf8] sm:$0xff] %v725_v31 }
 0x174 LB: >> { %v789_v24 = vld [vmem:[%s1754_s15 + $0x8] sm:$0xff]  ;;  %v788_v26 = vld [vmem:[%s1754_s15] sm:$0xff]  ;;  %v1623_v35 = vmov 0.0   ;;  %v791_v47 = vld [vmem:[%s1754_s15 + $0x18] sm:$0xff]  ;;  %s1240_s9 = sshll.u32 %s1617_s13, 1  ;;  %s1617_s13 = sphi %s1995_s13, %s768_s13  }
 0x175   : >> { %v793_v25 = vld [vmem:[%s1754_s15 + $0x28] sm:$0xff]  ;;  %v792_v32 = vld [vmem:[%s1754_s15 + $0x20] sm:$0xff]  ;;  %916 = vmatprep.mubr.f32.mxu0 %v1623_v35  ;;  %987 = vmatprep.mubr.f32.mxu1 %v1623_v35  ;;  %v795_v48 = vld [vmem:[%s1754_s15 + $0x38] sm:$0xff]  ;;  %s770_s8 = ssub.s32 7, %s1240_s9 }
 0x176   : >> { %v1382_v27 = vpack.c.bf16 %v793_v25, %v789_v24  ;;  %v797_v33 = vld [vmem:[%s1754_s15 + $0x48] sm:$0xff]  ;;  %v1384_v36 = vpack.c.bf16 %v792_v32, %v788_v26  ;;  %v796_v38 = vld [vmem:[%s1754_s15 + $0x40] sm:$0xff]  ;;  %v1414_v50 = vpack.c.bf16 %v795_v48, %v791_v47  ;;  %v790_v51 = vld [vmem:[%s1754_s15 + $0x10] sm:$0xff]  ;;  %s771_s14 = smul.u32 %s1605_s18, %s770_s8 }
 0x177   : >> { %v801_v34 = vld [vmem:[%s1754_s15 + $0x68] sm:$0xff]  ;;  %v800_v39 = vld [vmem:[%s1754_s15 + $0x60] sm:$0xff]  ;;  %v794_v52 = vld [vmem:[%s1754_s15 + $0x30] sm:$0xff] }
 0x178   : >> { %v1386_v37 = vpack.c.bf16 %v801_v34, %v797_v33  ;;  %v805_v40 = vld [vmem:[%s1754_s15 + $0x88] sm:$0xff]  ;;  %1383 = vmatprep.subr.bf16.mxu0 %v1382_v27  ;;  %v1388_v42 = vpack.c.bf16 %v800_v39, %v796_v38  ;;  %v804_v43 = vld [vmem:[%s1754_s15 + $0x80] sm:$0xff]  ;;  %v1416_v53 = vpack.c.bf16 %v794_v52, %v790_v51  ;;  %1415 = vmatprep.subr.bf16.mxu1 %v1414_v50  ;;  %v799_v55 = vld [vmem:[%s1754_s15 + $0x58] sm:$0xff]  ;;  %s2067_s11 = sadd.s32 %s1617_s13, %s771_s14  ;;  %s768_s13 = sadd.s32 1, %s1617_s13  }
 0x179   : >> { %v809_v41 = vld [vmem:[%s1754_s15 + $0xa8] sm:$0xff]  ;;  %1385 = vmatpush1.bf16.msra.mxu0 %v1384_v36  ;;  %v808_v44 = vld [vmem:[%s1754_s15 + $0xa0] sm:$0xff]  ;;  %v803_v56 = vld [vmem:[%s1754_s15 + $0x78] sm:$0xff]  ;;  %s1241_s12 = sshll.u32 %s2067_s11, 3  ;;  %p775_p8 = scmp.lt.s32.totalorder %s2067_s11, 8 }
 0x17a   : >> { %1387 = vmatprep.subr.bf16.mxu0 %v1386_v37  ;;  %v1390_v45 = vpack.c.bf16 %v809_v41, %v805_v40  ;;  %v813_v46 = vld [vmem:[%s1754_s15 + $0xc8] sm:$0xff]  ;;  %v1392_v54 = vpack.c.bf16 %v808_v44, %v804_v43  ;;  %v798_v57 = vld [vmem:[%s1754_s15 + $0x50] sm:$0xff]  ;;  %v812_v59 = vld [vmem:[%s1754_s15 + $0xc0] sm:$0xff]  ;;  %1417 = vmatpush1.bf16.msra.mxu1 %v1416_v53  ;;  %v1418_v61 = vpack.c.bf16 %v803_v56, %v799_v55  ;;  %s779_s21 = sshra.s32 %s1241_s12, 3  ;;  %s1029_s25 = scalar_lea.vmem %s1993_s10, %s1241_s12 [#allocation7] }
 0x17b   : >> { %v817_v49 = vld [vmem:[%s1754_s15 + $0xe8] sm:$0xff]  ;;  %v816_v60 = vld [vmem:[%s1754_s15 + $0xe0] sm:$0xff]  ;;  %v802_v62 = vld [vmem:[%s1754_s15 + $0x70] sm:$0xff]  ;;  %s1253_s23 = sshll.u32 %s779_s21, 5  ;;  %p765_p11 = scmp.ge.s32.totalorder %s768_s13, 8  }
 0x17c   : >> { %v1394_v58 = vpack.c.bf16 %v817_v49, %v813_v46  ;;  %v821_v63 = vld [vmem:[%s1754_s15 + $0x108] sm:$0xff]  ;;  %v1420_v1 = vpack.c.bf16 %v802_v62, %v798_v57  ;;  %v807_v2 = vld [vmem:[%s1754_s15 + $0x98] sm:$0xff]  ;;  %1419 = vmatprep.subr.bf16.mxu1 %v1418_v61  ;;  %v806_v4 = vld [vmem:[%s1754_s15 + $0x90] sm:$0xff]  ;;  %v1396_v6 = vpack.c.bf16 %v816_v60, %v812_v59  ;;  %s783_s26 = scalar_lea.vmem [#allocation4], %s1253_s23  ;;  %p2120_p6 = scmp.ne.s32.totalorder (%p765_p11), %s2118_s28, 0 }
 0x17d   : >> { %1389 = vmatpush1.bf16.msra.mxu0 %v1388_v42  ;;  %v825_v0 = vld [vmem:[%s1754_s15 + $0x128] sm:$0xff]  ;;  %v811_v3 = vld [vmem:[%s1754_s15 + $0xb8] sm:$0xff]  ;;  %v810_v5 = vld [vmem:[%s1754_s15 + $0xb0] sm:$0xff]  ;;  %s1022_s24 = scalar_select %p775_p8, 1, 0 }
 0x17e   : >> { %1391 = vmatprep.subr.bf16.mxu0 %v1390_v45  ;;  %v820_v7 = vld [vmem:[%s1754_s15 + $0x100] sm:$0xff]  ;;  %v1422_v9 = vpack.c.bf16 %v811_v3, %v807_v2  ;;  %v1398_v10 = vpack.c.bf16 %v825_v0, %v821_v63  ;;  %1421 = vmatpush1.bf16.msra.mxu1 %v1420_v1  ;;  %v829_v11 = vld [vmem:[%s1754_s15 + $0x148] sm:$0xff]  ;;  %v1424_v12 = vpack.c.bf16 %v810_v5, %v806_v4  ;;  %v815_v13 = vld [vmem:[%s1754_s15 + $0xd8] sm:$0xff] }
 0x17f   : >> { %v824_v8 = vld [vmem:[%s1754_s15 + $0x120] sm:$0xff]  ;;  %v819_v14 = vld [vmem:[%s1754_s15 + $0xf8] sm:$0xff]  ;;  %v833_v15 = vld [vmem:[%s1754_s15 + $0x168] sm:$0xff] }
 0x180   : >> { %1423 = vmatprep.subr.bf16.mxu1 %v1422_v9  ;;  %v1426_v16 = vpack.c.bf16 %v819_v14, %v815_v13  ;;  %v814_v17 = vld [vmem:[%s1754_s15 + $0xd0] sm:$0xff]  ;;  %v1400_v19 = vpack.c.bf16 %v824_v8, %v820_v7  ;;  %v823_v20 = vld [vmem:[%s1754_s15 + $0x118] sm:$0xff]  ;;  %v1402_v22 = vpack.c.bf16 %v833_v15, %v829_v11  ;;  %v828_v23 = vld [vmem:[%s1754_s15 + $0x140] sm:$0xff] }
 0x181   : >> { %1393 = vmatpush1.bf16.msra.mxu0 %v1392_v54  ;;  %v818_v18 = vld [vmem:[%s1754_s15 + $0xf0] sm:$0xff]  ;;  %v827_v21 = vld [vmem:[%s1754_s15 + $0x138] sm:$0xff]  ;;  %v832_v28 = vld [vmem:[%s1754_s15 + $0x160] sm:$0xff] }
 0x182   : >> { %1395 = vmatprep.subr.bf16.mxu0 %v1394_v58  ;;  %1425 = vmatpush1.bf16.msra.mxu1 %v1424_v12  ;;  %v837_v29 = vld [vmem:[%s1754_s15 + $0x188] sm:$0xff]  ;;  %v1428_v30 = vpack.c.bf16 %v818_v18, %v814_v17  ;;  %v1430_v24 = vpack.c.bf16 %v827_v21, %v823_v20  ;;  %v822_v25 = vld [vmem:[%s1754_s15 + $0x110] sm:$0xff]  ;;  %v831_v27 = vld [vmem:[%s1754_s15 + $0x158] sm:$0xff]  ;;  %v1404_v33 = vpack.c.bf16 %v832_v28, %v828_v23  ;;  %v1023_v21 = vstv %s1022_s24 }
 0x183   : >> { %v841_v31 = vld [vmem:[%s1754_s15 + $0x1a8] sm:$0xff]  ;;  %1427 = vmatprep.subr.bf16.mxu1 %v1426_v16  ;;  %v826_v26 = vld [vmem:[%s1754_s15 + $0x130] sm:$0xff]  ;;  %v835_v32 = vld [vmem:[%s1754_s15 + $0x178] sm:$0xff]  ;;  %vm1024_vm0 = vcmp.eq.s32.totalorder %v1023_v21, 1 }
 0x184   : >> { %v1406_v34 = vpack.c.bf16 %v841_v31, %v837_v29  ;;  %v836_v35 = vld [vmem:[%s1754_s15 + $0x180] sm:$0xff]  ;;  %v845_v37 = vld [vmem:[%s1754_s15 + $0x1c8] sm:$0xff]  ;;  %v1432_v38 = vpack.c.bf16 %v826_v26, %v822_v25  ;;  %v1434_v40 = vpack.c.bf16 %v835_v32, %v831_v27  ;;  %v830_v41 = vld [vmem:[%s1754_s15 + $0x150] sm:$0xff] }
 0x185   : >> { %1397 = vmatpush1.bf16.msra.mxu0 %v1396_v6  ;;  %v840_v36 = vld [vmem:[%s1754_s15 + $0x1a0] sm:$0xff]  ;;  %v849_v39 = vld [vmem:[%s1754_s15 + $0x1e8] sm:$0xff]  ;;  %v834_v42 = vld [vmem:[%s1754_s15 + $0x170] sm:$0xff] }
 0x186   : >> { %1399 = vmatprep.subr.bf16.mxu0 %v1398_v10  ;;  %1429 = vmatpush1.bf16.msra.mxu1 %v1428_v30  ;;  %v839_v43 = vld [vmem:[%s1754_s15 + $0x198] sm:$0xff]  ;;  %v1408_v45 = vpack.c.bf16 %v840_v36, %v836_v35  ;;  %v1410_v46 = vpack.c.bf16 %v849_v39, %v845_v37  ;;  %v844_v47 = vld [vmem:[%s1754_s15 + $0x1c0] sm:$0xff]  ;;  %v1436_v49 = vpack.c.bf16 %v834_v42, %v830_v41  ;;  %v838_v51 = vld [vmem:[%s1754_s15 + $0x190] sm:$0xff] }
 0x187   : >> { %1431 = vmatprep.subr.bf16.mxu1 %v1430_v24  ;;  %v843_v44 = vld [vmem:[%s1754_s15 + $0x1b8] sm:$0xff]  ;;  %v848_v48 = vld [vmem:[%s1754_s15 + $0x1e0] sm:$0xff]  ;;  %v842_v52 = vld [vmem:[%s1754_s15 + $0x1b0] sm:$0xff] }
 0x188   : >> { %v1438_v50 = vpack.c.bf16 %v843_v44, %v839_v43  ;;  %v847_v53 = vld [vmem:[%s1754_s15 + $0x1d8] sm:$0xff]  ;;  %v1412_v55 = vpack.c.bf16 %v848_v48, %v844_v47  ;;  %v1440_v56 = vpack.c.bf16 %v842_v52, %v838_v51  ;;  %v846_v58 = vld [vmem:[%s1754_s15 + $0x1d0] sm:$0xff]  ;;  %v787_v6 = vld [vmem:[%s783_s26 + $0x18] sm:$0xff] }
 0x189   : >> { %1401 = vmatpush1.bf16.msra.mxu0 %v1400_v19  ;;  %v851_v54 = vld [vmem:[%s1754_s15 + $0x1f8] sm:$0xff]  ;;  %v850_v59 = vld [vmem:[%s1754_s15 + $0x1f0] sm:$0xff]  ;;  %v786_v10 = vld [vmem:[%s783_s26 + $0x10] sm:$0xff] }
 0x18a   : >> { %1403 = vmatprep.subr.bf16.mxu0 %v1402_v22  ;;  %1433 = vmatpush1.bf16.msra.mxu1 %v1432_v38  ;;  %v1442_v57 = vpack.c.bf16 %v851_v54, %v847_v53  ;;  %v777_v60 = vld [vmem:[#allocation2] sm:$0xff]  ;;  %v1444_v61 = vpack.c.bf16 %v850_v59, %v846_v58  ;;  %v785_v63 = vld [vmem:[%s783_s26 + $0x8] sm:$0xff] }
 0x18b   : >> { %1435 = vmatprep.subr.bf16.mxu1 %v1434_v40  ;;  %v784_v62 = vld [vmem:[%s783_s26] sm:$0xff]  ;;  %v778_v19 = vld [vmem:[#allocation3] sm:$0xff] }
 0x18d   : >> { %1405 = vmatpush1.bf16.msra.mxu0 %v1404_v33 }
 0x18e   : >> { %1407 = vmatprep.subr.bf16.mxu0 %v1406_v34  ;;  %1437 = vmatpush1.bf16.msra.mxu1 %v1436_v49 }
 0x18f   : >> { %1439 = vmatprep.subr.bf16.mxu1 %v1438_v50 }
 0x191   : >> { %1409 = vmatpush1.bf16.msra.mxu0 %v1408_v45 }
 0x192   : >> { %1411 = vmatprep.subr.bf16.mxu0 %v1410_v46  ;;  %1441 = vmatpush1.bf16.msra.mxu1 %v1440_v56 }
 0x193   : >> { %1443 = vmatprep.subr.bf16.mxu1 %v1442_v57 }
 0x195   : >> { %1413 = vmatpush1.bf16.msra.mxu0 %v1412_v55 }
 0x196   : >> { %1445 = vmatpush1.bf16.msra.mxu1 %v1444_v61 }
 0x198   : >> { %917 = vmatmul.mubr.f32.vlgmr.msra.gmra.mrb[0].mxu0 %v777_v60 }
 0x199   : >> { %988 = vmatmul.mubr.f32.vlgmr.msra.gmra.mrb[0].mxu1 %v777_v60 }
 0x26b   : >> { %v918_v0 = vpop.f32.mrb[0].mxu0 }
 0x26c   : >> { %v994_v1 = vadd.f32 %v918_v0, %v784_v62  ;;  %v920_v2 = vpop.f32.mrb[1].mxu0  ;;  %v989_v7 = vpop.f32.mrb[0].mxu1 }
 0x26d   : >> { %v995_v3 = vadd.f32 %v920_v2, %v785_v63  ;;  %v991_v8 = vpop.f32.mrb[1].mxu1  ;;  %v996_v12 = vadd.f32 %v989_v7, %v786_v10 }
 0x26e   : >> { %v1244_v4 = vmul.f32 -1.442695, %v994_v1  ;;  %v997_v9 = vadd.f32 %v991_v8, %v787_v6 }
 0x26f   : >> { %v1245_v5 = vmul.f32 -1.442695, %v995_v3 }
 0x270   : >> { %1513 = vpow2.f32 %v1244_v4  ;;  %v1246_v11 = vmul.f32 -1.442695, %v997_v9 }
 0x271   : >> { %1515 = vpow2.f32 %v1245_v5 }
 0x272   : >> { %1517 = vpow2.f32 %v1246_v11 }
 0x273   : >> { %1519 = vtanh.f32 %v996_v12 }
 0x27a   : >> { %v1514_v13 = vpop.eup %1513 }
 0x27b   : >> { %v1516_v14 = vpop.eup %1515  ;;  %v1001_v15 = vadd.f32 1.0, %v1514_v13 }
 0x27c   : >> { %v1007_v16 = vadd.f32 1.0, %v1516_v14  ;;  %v1518_v17 = vpop.eup %1517 }
 0x27d   : >> { %1521 = vrcp.f32 %v1001_v15  ;;  %v1520_v18 = vpop.eup %1519  ;;  %v1014_v22 = vadd.f32 1.0, %v1518_v17 }
 0x27e   : >> { %1523 = vrcp.f32 %v1007_v16 }
 0x27f   : >> { %1525 = vrcp.f32 %v1014_v22 }
 0x287   : >> { %v1522_v20 = vpop.eup %1521 }
 0x288   : >> { %v1524_v23 = vpop.eup %1523  ;;  %v1018_v28 = vmul.f32 %v1522_v20, %v1520_v18 }
 0x289   : >> { %v1017_v29 = vmul.f32 %v1524_v23, %v778_v19  ;;  %v1526_v24 = vpop.eup %1525 }
 0x28b   : >> { %v1019_v30 = vadd.f32 %v1018_v28, %v1017_v29 }
 0x28d   : >> { %1527 = vtanh.f32 %v1019_v30  ;;  %v1025_v31 = vsel %vm1024_vm0, %v1019_v30, %v778_v19 }
 0x28e   : >> { %1027 = vst [vmem:[#allocation3] sm:$0xff] %v1025_v31 }
 0x295   : > { %767 = sbr.rel (!%p765_p11) target bundleno = 372 (0x174), region = 136 }
 0x297   : >> { %v1528_v25 = vpop.eup %1527 }
 0x298   : >> { %v1021_v26 = vmul.f32 %v1528_v25, %v1526_v24 }
 0x29a   : >> { %v1026_v27 = vsel %vm1024_vm0, %v1021_v26, %v777_v60 }
 0x29b   : >> { %1028 = vst [vmem:[#allocation2] sm:$0xff] %v1026_v27  ;;  %1030 = vst [vmem:[%s1029_s25] sm:$0xff] %v1026_v27 }
 0x29c   : > { %1037 = sbr.rel (!%p2120_p6) target bundleno = 680 (0x2a8), region = 55  ;;  %s1248_s29 = sshll.u32 (%p2120_p6), %s1605_s18, 3 }
 0x29d   : > { %s1046_s6 = scalar_lea.vmem (%p2120_p6), %s2115_s4, %s1248_s29 }
 0x2a2   : > { %v1088_v32 = vld [vmem:[%s1993_s10] sm:$0xff] (%p2120_p6)  ;;  %v1090_v33 = vld [vmem:[%s1993_s10 + $0x8] sm:$0xff] (%p2120_p6)  ;;  %v1092_v34 = vld [vmem:[%s1993_s10 + $0x10] sm:$0xff] (%p2120_p6) }
 0x2a3   : > { %v1094_v35 = vld [vmem:[%s1993_s10 + $0x18] sm:$0xff]  ;;  %v1096_v36 = vld [vmem:[%s1993_s10 + $0x20] sm:$0xff]  ;;  %v1098_v37 = vld [vmem:[%s1993_s10 + $0x28] sm:$0xff]  ;;  %1089 = vst [vmem:[%s1046_s6] sm:$0xff] %v1088_v32 }
 0x2a4   : > { %1091 = vst [vmem:[%s1046_s6 + $0x10] sm:$0xff] %v1090_v33  ;;  %1093 = vst [vmem:[%s1046_s6 + $0x20] sm:$0xff] %v1092_v34  ;;  %v1100_v38 = vld [vmem:[%s1993_s10 + $0x30] sm:$0xff]  ;;  %v1102_v39 = vld [vmem:[%s1993_s10 + $0x38] sm:$0xff] }
 0x2a5   : > { %1095 = vst [vmem:[%s1046_s6 + $0x30] sm:$0xff] %v1094_v35  ;;  %1097 = vst [vmem:[%s1046_s6 + $0x40] sm:$0xff] %v1096_v36 }
 0x2a6   : > { %1099 = vst [vmem:[%s1046_s6 + $0x50] sm:$0xff] %v1098_v37  ;;  %1101 = vst [vmem:[%s1046_s6 + $0x60] sm:$0xff] %v1100_v38 }
 0x2a7   : > { %1103 = vst [vmem:[%s1046_s6 + $0x70] sm:$0xff] %v1102_v39 }
 0x2a8 PF: > { %s17_s20 = sadd.s32 1, %s1613_s20   ;;  %s2121_s15 = smov %s1597_s16 }
 0x2a9   : > { %p14_p7 = scmp.ge.s32.totalorder %s17_s20, 4   ;;  %s2122_s16 = smov %s1601_s17 }
 0x2aa   : > { %s2123_s17 = smov %s1697_s27  ;;  %s2124_s18 = smov %s1609_s19 }
 0x2ab   : > { %s2125_s19 = smov %s2127_s22  ;;  %16 = sbr.rel (!%p14_p7) target bundleno = 4 (0x4), region = 147 }
 0x2b2   :  { %1119 = vsyncpa [#allocation6], 1 }
 0x2b3   :  { %1121 = vsyncpa [#allocation6 + $0x1], 1 }

</bundles_post_ra>
